<compile_context>
chip_gen: v6e
topology: v6e:2x2x1
jax: 0.10.0
libtpu: 0.0.40
codegen_flags: <defaults>
</compile_context>

<pallas_src>
import functools

import jax
import jax.numpy as jnp
from jax.experimental import pallas as pl
from jax.experimental.pallas import tpu as pltpu

_EPS = 1e-5


def _stego_kernel(xs_ref,                      # (6, N*L)  3-tap-stacked network input
                  w1s_ref, g1_ref, be1_ref,    # conv1 stacked weights (32,6) + BN1
                  w2_ref, g2_ref, be2_ref,     # conv2 per-tap weights (3,16,32) + BN2
                  w3s_ref, g3_ref, be3_ref,    # conv3 stacked weights (32,48) + BN3
                  w4_ref, b4_ref,              # conv4 per-tap weights (3,1,32) + bias
                  o_ref, *, seq_len, act_dtype):
    nl = xs_ref.shape[1]
    inv_n = 1.0 / nl

    # Boundary masks: computed exactly once (hoisted out of the conv helpers).
    pos = jax.lax.broadcasted_iota(jnp.int32, (1, nl), 1) % seq_len
    left_edge = pos == 0                  # first position of each length-L sample
    right_edge = pos == seq_len - 1       # last position of each length-L sample

    def shift_right(h):   # value at t-1, zero at each sample's first position
        return jnp.where(left_edge, 0.0, pltpu.roll(h, shift=1, axis=1))

    def shift_left(h):    # value at t+1, zero at each sample's last position
        return jnp.where(right_edge, 0.0, pltpu.roll(h, shift=nl - 1, axis=1))

    def bn_relu(h, gamma, beta):
        # Training-mode BatchNorm1d: biased per-channel stats over batch*length.
        # Single-pass: sum + sum-of-squares in f32, var = E[x^2] - mean^2.
        s = jnp.sum(h, axis=1, keepdims=True)
        sq = jnp.sum(h * h, axis=1, keepdims=True)
        mean = s * inv_n
        var = jnp.maximum(sq * inv_n - mean * mean, 0.0)
        scale = jax.lax.rsqrt(var + _EPS) * gamma
        return jnp.maximum((h - mean) * scale + beta, 0.0).astype(act_dtype)

    def conv_stacked(h_stack, w_stacked):
        # Cin <= Cout: taps stacked on the contraction axis -> one MXU push.
        return jnp.dot(w_stacked, h_stack, preferred_element_type=jnp.float32)

    def conv_out_shifted(h, w):
        # Cout < Cin: commute the roll/mask to the (smaller) output side. Exact,
        # because the matmul contracts only the sublane axis (independent per lane).
        y0 = jnp.dot(w[0], h, preferred_element_type=jnp.float32)
        y1 = jnp.dot(w[1], h, preferred_element_type=jnp.float32)
        y2 = jnp.dot(w[2], h, preferred_element_type=jnp.float32)
        return y1 + shift_right(y0) + shift_left(y2)

    # encoder  (conv biases for BN'd layers omitted: cancelled by BN mean subtraction)
    h = bn_relu(conv_stacked(xs_ref[...], w1s_ref[...]), g1_ref[...], be1_ref[...])
    h = bn_relu(conv_out_shifted(h, w2_ref[...]), g2_ref[...], be2_ref[...])
    # decoder
    hs = jnp.concatenate([shift_right(h), h, shift_left(h)], axis=0)      # (48, N*L)
    h = bn_relu(conv_stacked(hs, w3s_ref[...]), g3_ref[...], be3_ref[...])
    y = conv_out_shifted(h, w4_ref[...]) + b4_ref[...]
    o_ref[...] = jax.nn.sigmoid(y).astype(o_ref.dtype)                    # (1, N*L)


def _default_activation_dtype():
    # bf16 activations on v6e/v7x (native bf16 VALU; halves VMEM/vreg footprint of the
    # wide (C, N*L) tensors).  Keep f32 on v5e and older (no native bf16 VPU/EUP).
    try:
        kind = jax.devices()[0].device_kind.lower()
    except Exception:
        return jnp.float32
    if any(v in kind for v in ("v2", "v3", "v4", "v5")):
        return jnp.float32
    return jnp.bfloat16


def stego_autoencoder(audio, message, params, activation_dtype=None):
    """audio, message: (N, 1, L) float32  ->  (N, 1, L) float32."""
    act = _default_activation_dtype() if activation_dtype is None else activation_dtype

    x = jnp.concatenate([audio, message], axis=1)                  # (N, 2, L)  torch.cat dim=1
    n, _, seq_len = x.shape
    nl = n * seq_len

    # 3-tap stack of the network input (pure layout plumbing done once outside the
    # kernel): rows 0:2 = x[t-1], 2:4 = x[t], 4:6 = x[t+1], zero-padded per sample.
    xp = jnp.pad(x, ((0, 0), (0, 0), (1, 1)))
    x_taps = jnp.concatenate([xp[:, :, 0:seq_len],
                              xp[:, :, 1:seq_len + 1],
                              xp[:, :, 2:seq_len + 2]], axis=1)    # (N, 6, L)
    x_stack = jnp.transpose(x_taps, (1, 0, 2)).reshape(6, nl).astype(act)

    (w1, _b1, g1, be1), (w2, _b2, g2, be2), (w3, _b3, g3, be3), (w4, b4) = params
    # _b1/_b2/_b3 are mathematically dead: exactly cancelled by training-mode BN.

    w1s = jnp.concatenate([w1[0], w1[1], w1[2]], axis=1).astype(act)   # (32, 6)
    w3s = jnp.concatenate([w3[0], w3[1], w3[2]], axis=1).astype(act)   # (32, 48)
    w2a = w2.astype(act)                                               # (3, 16, 32)
    w4a = w4.astype(act)                                               # (3, 1, 32)

    flat = [x_stack, w1s, g1, be1, w2a, g2, be2, w3s, g3, be3, w4a, b4]

    def full_spec(shape):
        return pl.BlockSpec(shape, lambda *_: (0,) * len(shape))

    act_bytes = jnp.dtype(act).itemsize
    # Explicit VMEM budget sized to the live set (~140 act-dtype rows + ~90 f32 rows of
    # width N*L, 2x slack), clamped below every generation's physical VMEM
    # (v7x: 64 MiB/TC, v5e/v6e: 128 MiB; default scoped limit is only 16-32 MiB).
    vmem_limit = int(min(48 * 2 ** 20,
                         max(32 * 2 ** 20, 2 * nl * (140 * act_bytes + 90 * 4))))

    out_flat = pl.pallas_call(
        functools.partial(_stego_kernel, seq_len=seq_len, act_dtype=act),
        out_shape=jax.ShapeDtypeStruct((1, nl), jnp.float32),
        grid=(1,),
        in_specs=[full_spec(p.shape) for p in flat],
        out_specs=full_spec((1, nl)),
        compiler_params=pltpu.CompilerParams(
            dimension_semantics=("arbitrary",),
            vmem_limit_bytes=vmem_limit),
    )(*flat)

    # TODO(synk): for audio long enough to exceed the single-block VMEM budget, tile the
    # N*L (lane) axis over a 'parallel' grid dimension with two-phase BN (partial
    # sum/sumsq pass, then normalize+conv pass) and a 1-column halo; that also puts both
    # v7x TensorCores to work.  Unnecessary at these shapes.

    return out_flat.reshape(1, n, seq_len).transpose(1, 0, 2)         # back to (N, 1, L)


def init_params(key):
    """Deterministic parameter init mirroring the module's layer shapes / default inits."""
    layer_dims = [(2, 32), (32, 16), (16, 32), (32, 1)]      # (Cin, Cout) for the 4 convs
    has_bn = [True, True, True, False]
    params = []
    for (cin, cout), bn_flag in zip(layer_dims, has_bn):
        key, kw, kb = jax.random.split(key, 3)
        bound = 1.0 / (cin * 3) ** 0.5                       # PyTorch Conv1d default bound
        w = jax.random.uniform(kw, (cout, cin, 3), jnp.float32, -bound, bound)
        w = jnp.transpose(w, (2, 0, 1))                      # (3, Cout, Cin)
        b = jax.random.uniform(kb, (cout, 1), jnp.float32, -bound, bound)
        if bn_flag:
            gamma = jnp.ones((cout, 1), jnp.float32)         # BatchNorm1d default weight
            beta = jnp.zeros((cout, 1), jnp.float32)         # BatchNorm1d default bias
            params.append((w, b, gamma, beta))
        else:
            params.append((w, b))
    return params


def _reference_forward(audio, message, params):
    """Plain-JAX reference (NCL layout, biases included) matching the PyTorch module."""
    x = jnp.concatenate([audio, message], axis=1)            # (N, C, L)
    seq_len = x.shape[2]

    def conv(h, w, b):
        hp = jnp.pad(h, ((0, 0), (0, 0), (1, 1)))
        out = sum(jnp.einsum('oi,nit->not', w[k], hp[:, :, k:k + seq_len]) for k in range(3))
        return out + b[None]

    def bn(h, gamma, beta):
        mean = h.mean(axis=(0, 2), keepdims=True)
        var = ((h - mean) ** 2).mean(axis=(0, 2), keepdims=True)
        return (h - mean) / jnp.sqrt(var + _EPS) * gamma[None] + beta[None]

    (w1, b1, g1, be1), (w2, b2, g2, be2), (w3, b3, g3, be3), (w4, b4) = params
    h = jnp.maximum(bn(conv(x, w1, b1), g1, be1), 0.0)
    h = jnp.maximum(bn(conv(h, w2, b2), g2, be2), 0.0)
    h = jnp.maximum(bn(conv(h, w3, b3), g3, be3), 0.0)
    return jax.nn.sigmoid(conv(h, w4, b4))


if __name__ == "__main__":
    key = jax.random.PRNGKey(0)
    kp, ka, km = jax.random.split(key, 3)
    params = init_params(kp)

    batch, length = 2, 256
    audio = jax.random.normal(ka, (batch, 1, length), jnp.float32)
    message = jax.random.bernoulli(km, 0.5, (batch, 1, length)).astype(jnp.float32)

    ref = jax.block_until_ready(_reference_forward(audio, message, params))

    # Strict check with f32 activations (exercises all structural optimizations).
    out_f32 = jax.block_until_ready(
        stego_autoencoder(audio, message, params, activation_dtype=jnp.float32))
    assert out_f32.shape == (batch, 1, length), out_f32.shape
    assert jnp.allclose(out_f32, ref, rtol=1e-3, atol=1e-3), \
        float(jnp.max(jnp.abs(out_f32 - ref)))

    # Device-default precision path (bf16 activations on v6e/v7x, f32 on v5e).
    out = jax.block_until_ready(stego_autoencoder(audio, message, params))
    assert out.shape == (batch, 1, length), out.shape
    assert jnp.allclose(out, ref, atol=5e-2), float(jnp.max(jnp.abs(out - ref)))

    print("KERNEL_OK")
</pallas_src>

<mosaic_0001>
module attributes {stable_mosaic.version = 11 : i64} {
  func.func @_stego_kernel(%arg0: i32, %arg1: memref<6x512xf32, #tpu.memory_space<vmem>>, %arg2: memref<32x6xf32, #tpu.memory_space<vmem>>, %arg3: memref<32x1xf32, #tpu.memory_space<vmem>>, %arg4: memref<32x1xf32, #tpu.memory_space<vmem>>, %arg5: memref<3x16x32xf32, #tpu.memory_space<vmem>>, %arg6: memref<16x1xf32, #tpu.memory_space<vmem>>, %arg7: memref<16x1xf32, #tpu.memory_space<vmem>>, %arg8: memref<32x48xf32, #tpu.memory_space<vmem>>, %arg9: memref<32x1xf32, #tpu.memory_space<vmem>>, %arg10: memref<32x1xf32, #tpu.memory_space<vmem>>, %arg11: memref<3x1x32xf32, #tpu.memory_space<vmem>>, %arg12: memref<1x1xf32, #tpu.memory_space<vmem>>, %arg13: memref<1x512xf32, #tpu.memory_space<vmem>>) attributes {dimension_semantics = [#tpu.dimension_semantics<arbitrary>], iteration_bounds = array<i64: 1>, scalar_prefetch = 0 : i64, scratch_operands = 0 : i64, tpu.core_type = #tpu.core_type<tc>, window_params = [{pipeline_mode = #tpu.pipeline_mode<synchronous>, transform_indices = @transform_0, window_bounds = array<i64: 6, 512>}, {pipeline_mode = #tpu.pipeline_mode<synchronous>, transform_indices = @transform_1, window_bounds = array<i64: 32, 6>}, {pipeline_mode = #tpu.pipeline_mode<synchronous>, transform_indices = @transform_2, window_bounds = array<i64: 32, 1>}, {pipeline_mode = #tpu.pipeline_mode<synchronous>, transform_indices = @transform_3, window_bounds = array<i64: 32, 1>}, {pipeline_mode = #tpu.pipeline_mode<synchronous>, transform_indices = @transform_4, window_bounds = array<i64: 3, 16, 32>}, {pipeline_mode = #tpu.pipeline_mode<synchronous>, transform_indices = @transform_5, window_bounds = array<i64: 16, 1>}, {pipeline_mode = #tpu.pipeline_mode<synchronous>, transform_indices = @transform_6, window_bounds = array<i64: 16, 1>}, {pipeline_mode = #tpu.pipeline_mode<synchronous>, transform_indices = @transform_7, window_bounds = array<i64: 32, 48>}, {pipeline_mode = #tpu.pipeline_mode<synchronous>, transform_indices = @transform_8, window_bounds = array<i64: 32, 1>}, {pipeline_mode = #tpu.pipeline_mode<synchronous>, transform_indices = @transform_9, window_bounds = array<i64: 32, 1>}, {pipeline_mode = #tpu.pipeline_mode<synchronous>, transform_indices = @transform_10, window_bounds = array<i64: 3, 1, 32>}, {pipeline_mode = #tpu.pipeline_mode<synchronous>, transform_indices = @transform_11, window_bounds = array<i64: 1, 1>}, {pipeline_mode = #tpu.pipeline_mode<synchronous>, transform_indices = @transform_12, window_bounds = array<i64: 1, 512>}]} {
    %0 = tpu.iota {dimensions = array<i32: 1>} : vector<1x512xi32>
    %c256_i32 = arith.constant 256 : i32
    %c0_i32 = arith.constant 0 : i32
    %1 = arith.cmpi eq, %c256_i32, %c0_i32 : i32
    %c1_i32 = arith.constant 1 : i32
    %2 = arith.select %1, %c1_i32, %c256_i32 : i32
    %3 = vector.broadcast %2 : i32 to vector<1x512xi32>
    %4 = arith.remsi %0, %3 : vector<1x512xi32>
    %c0_i32_0 = arith.constant 0 : i32
    %5 = vector.broadcast %c0_i32_0 : i32 to vector<1x512xi32>
    %6 = arith.cmpi ne, %4, %5 : vector<1x512xi32>
    %c0_i32_1 = arith.constant 0 : i32
    %7 = vector.broadcast %c0_i32_1 : i32 to vector<1x512xi32>
    %8 = arith.cmpi slt, %4, %7 : vector<1x512xi32>
    %c0_i32_2 = arith.constant 0 : i32
    %9 = arith.cmpi slt, %2, %c0_i32_2 : i32
    %10 = vector.broadcast %9 : i1 to vector<1x512xi1>
    %11 = vector.broadcast %10 : vector<1x512xi1> to vector<1x512xi1>
    %12 = arith.xori %8, %11 : vector<1x512xi1>
    %13 = arith.andi %12, %6 : vector<1x512xi1>
    %14 = vector.broadcast %2 : i32 to vector<1x512xi32>
    %15 = arith.addi %4, %14 : vector<1x512xi32>
    %16 = arith.select %13, %15, %4 : vector<1x512xi1>, vector<1x512xi32>
    %c0_i32_3 = arith.constant 0 : i32
    %17 = vector.broadcast %c0_i32_3 : i32 to vector<1x512xi32>
    %18 = arith.cmpi eq, %16, %17 : vector<1x512xi32>
    %c255_i32 = arith.constant 255 : i32
    %19 = vector.broadcast %c255_i32 : i32 to vector<1x512xi32>
    %20 = arith.cmpi eq, %16, %19 : vector<1x512xi32>
    %c0 = arith.constant 0 : index
    %c0_4 = arith.constant 0 : index
    %21 = vector.load %arg1[%c0, %c0_4] : memref<6x512xf32, #tpu.memory_space<vmem>>, vector<6x512xf32>
    %c0_5 = arith.constant 0 : index
    %c0_6 = arith.constant 0 : index
    %22 = vector.load %arg2[%c0_5, %c0_6] : memref<32x6xf32, #tpu.memory_space<vmem>>, vector<32x6xf32>
    %cst = arith.constant dense<0.000000e+00> : vector<32x512xf32>
    %23 = tpu.matmul %22, %21, %cst {dimension_numbers = #tpu.dot_dimension_numbers<[1], [0], [0], [1], [0, 0, 1, 1], [], []>} : vector<32x6xf32>, vector<6x512xf32>, vector<32x512xf32> -> vector<32x512xf32>
    %c0_7 = arith.constant 0 : index
    %c0_8 = arith.constant 0 : index
    %24 = vector.load %arg3[%c0_7, %c0_8] : memref<32x1xf32, #tpu.memory_space<vmem>>, vector<32x1xf32>
    %c0_9 = arith.constant 0 : index
    %c0_10 = arith.constant 0 : index
    %25 = vector.load %arg4[%c0_9, %c0_10] : memref<32x1xf32, #tpu.memory_space<vmem>>, vector<32x1xf32>
    %cst_11 = arith.constant dense<0.000000e+00> : vector<32xf32>
    %26 = vector.multi_reduction <add>, %23, %cst_11 [1] : vector<32x512xf32> to vector<32xf32>
    %27 = vector.shape_cast %26 : vector<32xf32> to vector<32x1xf32>
    %28 = arith.mulf %23, %23 : vector<32x512xf32>
    %cst_12 = arith.constant dense<0.000000e+00> : vector<32xf32>
    %29 = vector.multi_reduction <add>, %28, %cst_12 [1] : vector<32x512xf32> to vector<32xf32>
    %30 = vector.shape_cast %29 : vector<32xf32> to vector<32x1xf32>
    %cst_13 = arith.constant 0.001953125 : f32
    %31 = vector.broadcast %cst_13 : f32 to vector<32x1xf32>
    %32 = arith.mulf %27, %31 : vector<32x1xf32>
    %cst_14 = arith.constant 0.001953125 : f32
    %33 = vector.broadcast %cst_14 : f32 to vector<32x1xf32>
    %34 = arith.mulf %30, %33 : vector<32x1xf32>
    %35 = arith.mulf %32, %32 : vector<32x1xf32>
    %36 = arith.subf %34, %35 : vector<32x1xf32>
    %cst_15 = arith.constant 0.000000e+00 : f32
    %37 = vector.broadcast %cst_15 : f32 to vector<32x1xf32>
    %38 = arith.maximumf %36, %37 : vector<32x1xf32>
    %cst_16 = arith.constant 9.99999974E-6 : f32
    %39 = vector.broadcast %cst_16 : f32 to vector<32x1xf32>
    %40 = arith.addf %38, %39 : vector<32x1xf32>
    %41 = math.rsqrt %40 : vector<32x1xf32>
    %42 = arith.mulf %41, %24 : vector<32x1xf32>
    %43 = vector.broadcast %32 : vector<32x1xf32> to vector<32x512xf32>
    %44 = arith.subf %23, %43 : vector<32x512xf32>
    %45 = vector.broadcast %42 : vector<32x1xf32> to vector<32x512xf32>
    %46 = arith.mulf %44, %45 : vector<32x512xf32>
    %47 = vector.broadcast %25 : vector<32x1xf32> to vector<32x512xf32>
    %48 = arith.addf %46, %47 : vector<32x512xf32>
    %cst_17 = arith.constant 0.000000e+00 : f32
    %49 = vector.broadcast %cst_17 : f32 to vector<32x512xf32>
    %50 = arith.maximumf %48, %49 : vector<32x512xf32>
    %c0_18 = arith.constant 0 : index
    %c0_19 = arith.constant 0 : index
    %c0_20 = arith.constant 0 : index
    %51 = vector.load %arg5[%c0_18, %c0_19, %c0_20] : memref<3x16x32xf32, #tpu.memory_space<vmem>>, vector<3x16x32xf32>
    %52 = vector.extract_strided_slice %51 {offsets = [0, 0, 0], sizes = [1, 16, 32], strides = [1, 1, 1]} : vector<3x16x32xf32> to vector<1x16x32xf32>
    %53 = vector.shape_cast %52 : vector<1x16x32xf32> to vector<16x32xf32>
    %cst_21 = arith.constant dense<0.000000e+00> : vector<16x512xf32>
    %54 = tpu.matmul %53, %50, %cst_21 {dimension_numbers = #tpu.dot_dimension_numbers<[1], [0], [0], [1], [0, 0, 1, 1], [], []>} : vector<16x32xf32>, vector<32x512xf32>, vector<16x512xf32> -> vector<16x512xf32>
    %55 = vector.extract_strided_slice %51 {offsets = [1, 0, 0], sizes = [1, 16, 32], strides = [1, 1, 1]} : vector<3x16x32xf32> to vector<1x16x32xf32>
    %56 = vector.shape_cast %55 : vector<1x16x32xf32> to vector<16x32xf32>
    %cst_22 = arith.constant dense<0.000000e+00> : vector<16x512xf32>
    %57 = tpu.matmul %56, %50, %cst_22 {dimension_numbers = #tpu.dot_dimension_numbers<[1], [0], [0], [1], [0, 0, 1, 1], [], []>} : vector<16x32xf32>, vector<32x512xf32>, vector<16x512xf32> -> vector<16x512xf32>
    %58 = vector.extract_strided_slice %51 {offsets = [2, 0, 0], sizes = [1, 16, 32], strides = [1, 1, 1]} : vector<3x16x32xf32> to vector<1x16x32xf32>
    %59 = vector.shape_cast %58 : vector<1x16x32xf32> to vector<16x32xf32>
    %cst_23 = arith.constant dense<0.000000e+00> : vector<16x512xf32>
    %60 = tpu.matmul %59, %50, %cst_23 {dimension_numbers = #tpu.dot_dimension_numbers<[1], [0], [0], [1], [0, 0, 1, 1], [], []>} : vector<16x32xf32>, vector<32x512xf32>, vector<16x512xf32> -> vector<16x512xf32>
    %c1_i32_24 = arith.constant 1 : i32
    %61 = tpu.dynamic_rotate %54 by %c1_i32_24 dim 1 : vector<16x512xf32>, i32 -> vector<16x512xf32>
    %cst_25 = arith.constant 0.000000e+00 : f32
    %62 = vector.shape_cast %18 : vector<1x512xi1> to vector<1x512xi1>
    %63 = vector.broadcast %62 : vector<1x512xi1> to vector<16x512xi1>
    %64 = vector.broadcast %cst_25 : f32 to vector<16x512xf32>
    %65 = arith.select %63, %64, %61 : vector<16x512xi1>, vector<16x512xf32>
    %66 = arith.addf %57, %65 : vector<16x512xf32>
    %c511_i32 = arith.constant 511 : i32
    %67 = tpu.dynamic_rotate %60 by %c511_i32 dim 1 : vector<16x512xf32>, i32 -> vector<16x512xf32>
    %cst_26 = arith.constant 0.000000e+00 : f32
    %68 = vector.shape_cast %20 : vector<1x512xi1> to vector<1x512xi1>
    %69 = vector.broadcast %68 : vector<1x512xi1> to vector<16x512xi1>
    %70 = vector.broadcast %cst_26 : f32 to vector<16x512xf32>
    %71 = arith.select %69, %70, %67 : vector<16x512xi1>, vector<16x512xf32>
    %72 = arith.addf %66, %71 : vector<16x512xf32>
    %c0_27 = arith.constant 0 : index
    %c0_28 = arith.constant 0 : index
    %73 = vector.load %arg6[%c0_27, %c0_28] : memref<16x1xf32, #tpu.memory_space<vmem>>, vector<16x1xf32>
    %c0_29 = arith.constant 0 : index
    %c0_30 = arith.constant 0 : index
    %74 = vector.load %arg7[%c0_29, %c0_30] : memref<16x1xf32, #tpu.memory_space<vmem>>, vector<16x1xf32>
    %cst_31 = arith.constant dense<0.000000e+00> : vector<16xf32>
    %75 = vector.multi_reduction <add>, %72, %cst_31 [1] : vector<16x512xf32> to vector<16xf32>
    %76 = vector.shape_cast %75 : vector<16xf32> to vector<16x1xf32>
    %77 = arith.mulf %72, %72 : vector<16x512xf32>
    %cst_32 = arith.constant dense<0.000000e+00> : vector<16xf32>
    %78 = vector.multi_reduction <add>, %77, %cst_32 [1] : vector<16x512xf32> to vector<16xf32>
    %79 = vector.shape_cast %78 : vector<16xf32> to vector<16x1xf32>
    %cst_33 = arith.constant 0.001953125 : f32
    %80 = vector.broadcast %cst_33 : f32 to vector<16x1xf32>
    %81 = arith.mulf %76, %80 : vector<16x1xf32>
    %cst_34 = arith.constant 0.001953125 : f32
    %82 = vector.broadcast %cst_34 : f32 to vector<16x1xf32>
    %83 = arith.mulf %79, %82 : vector<16x1xf32>
    %84 = arith.mulf %81, %81 : vector<16x1xf32>
    %85 = arith.subf %83, %84 : vector<16x1xf32>
    %cst_35 = arith.constant 0.000000e+00 : f32
    %86 = vector.broadcast %cst_35 : f32 to vector<16x1xf32>
    %87 = arith.maximumf %85, %86 : vector<16x1xf32>
    %cst_36 = arith.constant 9.99999974E-6 : f32
    %88 = vector.broadcast %cst_36 : f32 to vector<16x1xf32>
    %89 = arith.addf %87, %88 : vector<16x1xf32>
    %90 = math.rsqrt %89 : vector<16x1xf32>
    %91 = arith.mulf %90, %73 : vector<16x1xf32>
    %92 = vector.broadcast %81 : vector<16x1xf32> to vector<16x512xf32>
    %93 = arith.subf %72, %92 : vector<16x512xf32>
    %94 = vector.broadcast %91 : vector<16x1xf32> to vector<16x512xf32>
    %95 = arith.mulf %93, %94 : vector<16x512xf32>
    %96 = vector.broadcast %74 : vector<16x1xf32> to vector<16x512xf32>
    %97 = arith.addf %95, %96 : vector<16x512xf32>
    %cst_37 = arith.constant 0.000000e+00 : f32
    %98 = vector.broadcast %cst_37 : f32 to vector<16x512xf32>
    %99 = arith.maximumf %97, %98 : vector<16x512xf32>
    %c1_i32_38 = arith.constant 1 : i32
    %100 = tpu.dynamic_rotate %99 by %c1_i32_38 dim 1 : vector<16x512xf32>, i32 -> vector<16x512xf32>
    %cst_39 = arith.constant 0.000000e+00 : f32
    %101 = vector.shape_cast %18 : vector<1x512xi1> to vector<1x512xi1>
    %102 = vector.broadcast %101 : vector<1x512xi1> to vector<16x512xi1>
    %103 = vector.broadcast %cst_39 : f32 to vector<16x512xf32>
    %104 = arith.select %102, %103, %100 : vector<16x512xi1>, vector<16x512xf32>
    %c511_i32_40 = arith.constant 511 : i32
    %105 = tpu.dynamic_rotate %99 by %c511_i32_40 dim 1 : vector<16x512xf32>, i32 -> vector<16x512xf32>
    %cst_41 = arith.constant 0.000000e+00 : f32
    %106 = vector.shape_cast %20 : vector<1x512xi1> to vector<1x512xi1>
    %107 = vector.broadcast %106 : vector<1x512xi1> to vector<16x512xi1>
    %108 = vector.broadcast %cst_41 : f32 to vector<16x512xf32>
    %109 = arith.select %107, %108, %105 : vector<16x512xi1>, vector<16x512xf32>
    %110 = tpu.concatenate %104, %99, %109 in 0 : vector<16x512xf32>, vector<16x512xf32>, vector<16x512xf32> -> vector<48x512xf32>
    %c0_42 = arith.constant 0 : index
    %c0_43 = arith.constant 0 : index
    %111 = vector.load %arg8[%c0_42, %c0_43] : memref<32x48xf32, #tpu.memory_space<vmem>>, vector<32x48xf32>
    %cst_44 = arith.constant dense<0.000000e+00> : vector<32x512xf32>
    %112 = tpu.matmul %111, %110, %cst_44 {dimension_numbers = #tpu.dot_dimension_numbers<[1], [0], [0], [1], [0, 0, 1, 1], [], []>} : vector<32x48xf32>, vector<48x512xf32>, vector<32x512xf32> -> vector<32x512xf32>
    %c0_45 = arith.constant 0 : index
    %c0_46 = arith.constant 0 : index
    %113 = vector.load %arg9[%c0_45, %c0_46] : memref<32x1xf32, #tpu.memory_space<vmem>>, vector<32x1xf32>
    %c0_47 = arith.constant 0 : index
    %c0_48 = arith.constant 0 : index
    %114 = vector.load %arg10[%c0_47, %c0_48] : memref<32x1xf32, #tpu.memory_space<vmem>>, vector<32x1xf32>
    %cst_49 = arith.constant dense<0.000000e+00> : vector<32xf32>
    %115 = vector.multi_reduction <add>, %112, %cst_49 [1] : vector<32x512xf32> to vector<32xf32>
    %116 = vector.shape_cast %115 : vector<32xf32> to vector<32x1xf32>
    %117 = arith.mulf %112, %112 : vector<32x512xf32>
    %cst_50 = arith.constant dense<0.000000e+00> : vector<32xf32>
    %118 = vector.multi_reduction <add>, %117, %cst_50 [1] : vector<32x512xf32> to vector<32xf32>
    %119 = vector.shape_cast %118 : vector<32xf32> to vector<32x1xf32>
    %cst_51 = arith.constant 0.001953125 : f32
    %120 = vector.broadcast %cst_51 : f32 to vector<32x1xf32>
    %121 = arith.mulf %116, %120 : vector<32x1xf32>
    %cst_52 = arith.constant 0.001953125 : f32
    %122 = vector.broadcast %cst_52 : f32 to vector<32x1xf32>
    %123 = arith.mulf %119, %122 : vector<32x1xf32>
    %124 = arith.mulf %121, %121 : vector<32x1xf32>
    %125 = arith.subf %123, %124 : vector<32x1xf32>
    %cst_53 = arith.constant 0.000000e+00 : f32
    %126 = vector.broadcast %cst_53 : f32 to vector<32x1xf32>
    %127 = arith.maximumf %125, %126 : vector<32x1xf32>
    %cst_54 = arith.constant 9.99999974E-6 : f32
    %128 = vector.broadcast %cst_54 : f32 to vector<32x1xf32>
    %129 = arith.addf %127, %128 : vector<32x1xf32>
    %130 = math.rsqrt %129 : vector<32x1xf32>
    %131 = arith.mulf %130, %113 : vector<32x1xf32>
    %132 = vector.broadcast %121 : vector<32x1xf32> to vector<32x512xf32>
    %133 = arith.subf %112, %132 : vector<32x512xf32>
    %134 = vector.broadcast %131 : vector<32x1xf32> to vector<32x512xf32>
    %135 = arith.mulf %133, %134 : vector<32x512xf32>
    %136 = vector.broadcast %114 : vector<32x1xf32> to vector<32x512xf32>
    %137 = arith.addf %135, %136 : vector<32x512xf32>
    %cst_55 = arith.constant 0.000000e+00 : f32
    %138 = vector.broadcast %cst_55 : f32 to vector<32x512xf32>
    %139 = arith.maximumf %137, %138 : vector<32x512xf32>
    %c0_56 = arith.constant 0 : index
    %c0_57 = arith.constant 0 : index
    %c0_58 = arith.constant 0 : index
    %140 = vector.load %arg11[%c0_56, %c0_57, %c0_58] : memref<3x1x32xf32, #tpu.memory_space<vmem>>, vector<3x1x32xf32>
    %141 = vector.extract_strided_slice %140 {offsets = [0, 0, 0], sizes = [1, 1, 32], strides = [1, 1, 1]} : vector<3x1x32xf32> to vector<1x1x32xf32>
    %142 = vector.shape_cast %141 : vector<1x1x32xf32> to vector<1x32xf32>
    %cst_59 = arith.constant dense<0.000000e+00> : vector<1x512xf32>
    %143 = tpu.matmul %142, %139, %cst_59 {dimension_numbers = #tpu.dot_dimension_numbers<[1], [0], [0], [1], [0, 0, 1, 1], [], []>} : vector<1x32xf32>, vector<32x512xf32>, vector<1x512xf32> -> vector<1x512xf32>
    %144 = vector.extract_strided_slice %140 {offsets = [1, 0, 0], sizes = [1, 1, 32], strides = [1, 1, 1]} : vector<3x1x32xf32> to vector<1x1x32xf32>
    %145 = vector.shape_cast %144 : vector<1x1x32xf32> to vector<1x32xf32>
    %cst_60 = arith.constant dense<0.000000e+00> : vector<1x512xf32>
    %146 = tpu.matmul %145, %139, %cst_60 {dimension_numbers = #tpu.dot_dimension_numbers<[1], [0], [0], [1], [0, 0, 1, 1], [], []>} : vector<1x32xf32>, vector<32x512xf32>, vector<1x512xf32> -> vector<1x512xf32>
    %147 = vector.extract_strided_slice %140 {offsets = [2, 0, 0], sizes = [1, 1, 32], strides = [1, 1, 1]} : vector<3x1x32xf32> to vector<1x1x32xf32>
    %148 = vector.shape_cast %147 : vector<1x1x32xf32> to vector<1x32xf32>
    %cst_61 = arith.constant dense<0.000000e+00> : vector<1x512xf32>
    %149 = tpu.matmul %148, %139, %cst_61 {dimension_numbers = #tpu.dot_dimension_numbers<[1], [0], [0], [1], [0, 0, 1, 1], [], []>} : vector<1x32xf32>, vector<32x512xf32>, vector<1x512xf32> -> vector<1x512xf32>
    %c1_i32_62 = arith.constant 1 : i32
    %150 = tpu.dynamic_rotate %143 by %c1_i32_62 dim 1 : vector<1x512xf32>, i32 -> vector<1x512xf32>
    %cst_63 = arith.constant 0.000000e+00 : f32
    %151 = vector.broadcast %cst_63 : f32 to vector<1x512xf32>
    %152 = arith.select %18, %151, %150 : vector<1x512xi1>, vector<1x512xf32>
    %153 = arith.addf %146, %152 : vector<1x512xf32>
    %c511_i32_64 = arith.constant 511 : i32
    %154 = tpu.dynamic_rotate %149 by %c511_i32_64 dim 1 : vector<1x512xf32>, i32 -> vector<1x512xf32>
    %cst_65 = arith.constant 0.000000e+00 : f32
    %155 = vector.broadcast %cst_65 : f32 to vector<1x512xf32>
    %156 = arith.select %20, %155, %154 : vector<1x512xi1>, vector<1x512xf32>
    %157 = arith.addf %153, %156 : vector<1x512xf32>
    %c0_66 = arith.constant 0 : index
    %c0_67 = arith.constant 0 : index
    %158 = vector.load %arg12[%c0_66, %c0_67] : memref<1x1xf32, #tpu.memory_space<vmem>>, vector<1x1xf32>
    %159 = vector.broadcast %158 : vector<1x1xf32> to vector<1x512xf32>
    %160 = arith.addf %157, %159 : vector<1x512xf32>
    %161 = arith.negf %160 : vector<1x512xf32>
    %162 = math.exp %161 : vector<1x512xf32>
    %cst_68 = arith.constant 1.000000e+00 : f32
    %163 = vector.broadcast %cst_68 : f32 to vector<1x512xf32>
    %164 = arith.addf %163, %162 : vector<1x512xf32>
    %165 = arith.divf %163, %164 : vector<1x512xf32>
    %c0_69 = arith.constant 0 : index
    %c0_70 = arith.constant 0 : index
    %166 = vector.load %arg13[%c0_69, %c0_70] : memref<1x512xf32, #tpu.memory_space<vmem>>, vector<1x512xf32>
    tpu.vector_store %arg13[%c0_69, %c0_70], %165 {strides = array<i32>} : memref<1x512xf32, #tpu.memory_space<vmem>>, vector<1x512xf32>,
    return
  }
  func.func @transform_0(%arg0: i32) -> (i32, i32) {
    %c0_i32 = arith.constant 0 : i32
    %c0_i32_0 = arith.constant 0 : i32
    %c0_i32_1 = arith.constant 0 : i32
    return %c0_i32, %c0_i32_0 : i32, i32
  }
  func.func @transform_1(%arg0: i32) -> (i32, i32) {
    %c0_i32 = arith.constant 0 : i32
    %c0_i32_0 = arith.constant 0 : i32
    %c0_i32_1 = arith.constant 0 : i32
    return %c0_i32, %c0_i32_0 : i32, i32
  }
  func.func @transform_2(%arg0: i32) -> (i32, i32) {
    %c0_i32 = arith.constant 0 : i32
    %c0_i32_0 = arith.constant 0 : i32
    %c0_i32_1 = arith.constant 0 : i32
    return %c0_i32, %c0_i32_0 : i32, i32
  }
  func.func @transform_3(%arg0: i32) -> (i32, i32) {
    %c0_i32 = arith.constant 0 : i32
    %c0_i32_0 = arith.constant 0 : i32
    %c0_i32_1 = arith.constant 0 : i32
    return %c0_i32, %c0_i32_0 : i32, i32
  }
  func.func @transform_4(%arg0: i32) -> (i32, i32, i32) {
    %c0_i32 = arith.constant 0 : i32
    %c0_i32_0 = arith.constant 0 : i32
    %c0_i32_1 = arith.constant 0 : i32
    %c0_i32_2 = arith.constant 0 : i32
    return %c0_i32, %c0_i32_0, %c0_i32_1 : i32, i32, i32
  }
  func.func @transform_5(%arg0: i32) -> (i32, i32) {
    %c0_i32 = arith.constant 0 : i32
    %c0_i32_0 = arith.constant 0 : i32
    %c0_i32_1 = arith.constant 0 : i32
    return %c0_i32, %c0_i32_0 : i32, i32
  }
  func.func @transform_6(%arg0: i32) -> (i32, i32) {
    %c0_i32 = arith.constant 0 : i32
    %c0_i32_0 = arith.constant 0 : i32
    %c0_i32_1 = arith.constant 0 : i32
    return %c0_i32, %c0_i32_0 : i32, i32
  }
  func.func @transform_7(%arg0: i32) -> (i32, i32) {
    %c0_i32 = arith.constant 0 : i32
    %c0_i32_0 = arith.constant 0 : i32
    %c0_i32_1 = arith.constant 0 : i32
    return %c0_i32, %c0_i32_0 : i32, i32
  }
  func.func @transform_8(%arg0: i32) -> (i32, i32) {
    %c0_i32 = arith.constant 0 : i32
    %c0_i32_0 = arith.constant 0 : i32
    %c0_i32_1 = arith.constant 0 : i32
    return %c0_i32, %c0_i32_0 : i32, i32
  }
  func.func @transform_9(%arg0: i32) -> (i32, i32) {
    %c0_i32 = arith.constant 0 : i32
    %c0_i32_0 = arith.constant 0 : i32
    %c0_i32_1 = arith.constant 0 : i32
    return %c0_i32, %c0_i32_0 : i32, i32
  }
  func.func @transform_10(%arg0: i32) -> (i32, i32, i32) {
    %c0_i32 = arith.constant 0 : i32
    %c0_i32_0 = arith.constant 0 : i32
    %c0_i32_1 = arith.constant 0 : i32
    %c0_i32_2 = arith.constant 0 : i32
    return %c0_i32, %c0_i32_0, %c0_i32_1 : i32, i32, i32
  }
  func.func @transform_11(%arg0: i32) -> (i32, i32) {
    %c0_i32 = arith.constant 0 : i32
    %c0_i32_0 = arith.constant 0 : i32
    %c0_i32_1 = arith.constant 0 : i32
    return %c0_i32, %c0_i32_0 : i32, i32
  }
  func.func @transform_12(%arg0: i32) -> (i32, i32) {
    %c0_i32 = arith.constant 0 : i32
    %c0_i32_0 = arith.constant 0 : i32
    %c0_i32_1 = arith.constant 0 : i32
    return %c0_i32, %c0_i32_0 : i32, i32
  }
}

</mosaic_0001>

<bundles_post_ra>
// kernel: tpu_custom_call.1
= control target key start
LH: loop header
LB: loop body
LE: loop exit
PB: predicated region body
PF: predicated region fallthrough
CT: control target
= control target key end

     0   :  { %s3170_s0 = inlined_call_operand.vmem [shape: f32[6,512], index: 0, kind: input, shape index: {}]   ;;  %s3171_s1 = inlined_call_operand.vmem [shape: f32[32,6], index: 1, kind: input, shape index: {}]   ;;  %s3172_s2 = inlined_call_operand.vmem [shape: f32[32,1], index: 2, kind: input, shape index: {}]   ;;  %s3173_s3 = inlined_call_operand.vmem [shape: f32[32,1], index: 3, kind: input, shape index: {}]   ;;  %s3174_s4 = inlined_call_operand.vmem [shape: f32[3,16,32], index: 4, kind: input, shape index: {}]   ;;  %s3175_s5 = inlined_call_operand.vmem [shape: f32[16,1], index: 5, kind: input, shape index: {}]   ;;  %s3176_s6 = inlined_call_operand.vmem [shape: f32[16,1], index: 6, kind: input, shape index: {}]   ;;  %s3177_s7 = inlined_call_operand.vmem [shape: f32[32,48], index: 7, kind: input, shape index: {}]   ;;  %s3178_s8 = inlined_call_operand.vmem [shape: f32[32,1], index: 8, kind: input, shape index: {}]   ;;  %s3179_s9 = inlined_call_operand.vmem [shape: f32[32,1], index: 9, kind: input, shape index: {}]   ;;  %s3180_s10 = inlined_call_operand.vmem [shape: f32[3,1,32], index: 10, kind: input, shape index: {}]   ;;  %s3181_s11 = inlined_call_operand.<no memory space> [shape: f32[1,1], index: 11, kind: input, shape index: {}]   ;;  %s3182_s12 = inlined_call_operand.hbm [shape: f32[1,512], index: 12, kind: output, shape index: {}]  }
   0x1   :  { %v17_v0 = vstv %s3181_s11 }
   0x2   :  { %18 = vst [vmem:[#allocation2] sm:$0x1] %v17_v0 }
   0x3   :  { %v106_v1 = vld [vmem:[%s3170_s0 + $0x8] sm:$0x3f]  ;;  %vm126_vm0 = vcmask 1045504   ;;  %v105_v2 = vld [vmem:[%s3170_s0] sm:$0x3f]  ;;  %v2337_v3 = vmov 0.0  }
   0x4   :  { %2213 = vmatprep.subr.msk.mxu0 %vm126_vm0, %v106_v1  ;;  %203 = vmatprep.mubr.f32.mxu0 %v2337_v3  ;;  %v109_v4 = vld [vmem:[%s3171_s1] sm:$0xff]  ;;  %vm113_vm1 = vcmask 48128   ;;  %v108_v5 = vld [vmem:[%s3170_s0 + $0x18] sm:$0x3f]  ;;  %v107_v6 = vld [vmem:[%s3170_s0 + $0x10] sm:$0x3f] }
   0x5   :  { %2214 = vmatpush1.msk.msra.mxu0 %vm126_vm0, %v105_v2  ;;  %2219 = vmatprep.subr.msk.mxu1 %vm126_vm0, %v108_v5 }
   0x6   :  { %2215 = vmatmul.mubr.msk.f32.vlgmr.msra.gmra.mxu0 %vm113_vm1, %v109_v4  ;;  %2220 = vmatpush1.msk.msra.mxu1 %vm126_vm0, %v107_v6 }
   0x7   :  { %19 = vsyncpa [#allocation4], 0  ;;  %292 = vmatprep.mubr.f32.mxu1 %v2337_v3  ;;  %209 = vmatprep.mubr.f32.mxu0 %v2337_v3  ;;  %v110_v7 = vld [vmem:[%s3171_s1 + $0x8] sm:$0xff]  ;;  %v111_v8 = vld [vmem:[%s3171_s1 + $0x10] sm:$0xff]  ;;  %v2338_v2 = vmov 0   ;;  %vm523_vm2 = vcmask 261120  }
   0x8   :  { %2221 = vmatmul.mubr.msk.f32.vlgmr.msra.gmra.mxu1 %vm113_vm1, %v109_v4  ;;  %v112_v9 = vld [vmem:[%s3171_s1 + $0x18] sm:$0xff]  ;;  %2277 = vset.pattern.permute.xlu0 %v2338_v2  ;;  %s2339_s23 = smov 1   ;;  %vm1262_vm12 = vcmask 392192  }
   0x9   :  { %298 = vmatprep.mubr.f32.mxu1 %v2337_v3  ;;  %2278 = vset.pattern.permute.xlu1 %v2338_v2  ;;  %v322_v2 = vld [vmem:[%s3173_s3 + $0x8] sm:$0xff] }
   0xa   :  { %2216 = vmatmul.mubr.msk.f32.gmra.mxu0 %vm113_vm1, %v110_v7 }
   0xb   :  { %215 = vmatprep.mubr.f32.mxu0 %v2337_v3 }
   0xc   :  { %2222 = vmatmul.mubr.msk.f32.gmra.mxu1 %vm113_vm1, %v110_v7 }
   0xd   :  { %304 = vmatprep.mubr.f32.mxu1 %v2337_v3 }
   0xe   :  { %2217 = vmatmul.mubr.msk.f32.gmra.mxu0 %vm113_vm1, %v111_v8 }
   0xf   :  { %221 = vmatprep.mubr.f32.mxu0 %v2337_v3 }
  0x10   :  { %2223 = vmatmul.mubr.msk.f32.gmra.mxu1 %vm113_vm1, %v111_v8 }
  0x11   :  { %310 = vmatprep.mubr.f32.mxu1 %v2337_v3 }
  0x12   :  { %2218 = vmatmul.mubr.msk.f32.gmra.mxu0 %vm113_vm1, %v112_v9 }
  0x13   :  { %594 = vmatprep.mubr.f32.mxu0 %v2337_v3 }
  0x14   :  { %2224 = vmatmul.mubr.msk.f32.gmra.mxu1 %vm113_vm1, %v112_v9 }
  0x15   :  { %671 = vmatprep.mubr.f32.mxu1 %v2337_v3 }
  0xc6   :  { %v2453_v10 = vpop.f32.mrf.mxu0 }
  0xc7   :  { %v345_v46 = vmul.f32 %v2453_v10, %v2453_v10 }
  0xc8   :  { %v2455_v11 = vpop.f32.mrf.mxu0  ;;  %v2457_v12 = vpop.f32.mrf.mxu1 }
  0xc9   :  { %v325_v42 = vadd.f32 %v2455_v11, %v2453_v10  ;;  %v346_v43 = vmul.f32 %v2455_v11, %v2455_v11  ;;  %v347_v53 = vmul.f32 %v2457_v12, %v2457_v12 }
  0xca   :  { %v2459_v13 = vpop.f32.mrf.mxu0  ;;  %v2461_v14 = vpop.f32.mrf.mxu1 }
  0xcb   :  { %v349_v40 = vmul.f32 %v2459_v13, %v2459_v13  ;;  %v326_v56 = vadd.f32 %v325_v42, %v2457_v12  ;;  %v361_v57 = vadd.f32 %v346_v43, %v345_v46  ;;  %v348_v0 = vmul.f32 %v2461_v14, %v2461_v14 }
  0xcc   :  { %v2463_v15 = vpop.f32.mrf.mxu0  ;;  %v2465_v16 = vpop.f32.mrf.mxu1 }
  0xcd   :  { %v330_v17 = vadd.f32 %v2463_v15, %v2459_v13  ;;  %v350_v30 = vmul.f32 %v2463_v15, %v2463_v15  ;;  %v351_v47 = vmul.f32 %v2465_v16, %v2465_v16  ;;  %v327_v60 = vadd.f32 %v326_v56, %v2461_v14 }
  0xce   :  { %v2469_v18 = vpop.f32.mrf.mxu0  ;;  %v2471_v19 = vpop.f32.mrf.mxu1  ;;  %v362_v62 = vadd.f32 %v361_v57, %v347_v53 }
  0xcf   :  { %v331_v20 = vadd.f32 %v330_v17, %v2465_v16  ;;  %v353_v26 = vmul.f32 %v2469_v18, %v2469_v18  ;;  %v366_v48 = vadd.f32 %v350_v30, %v349_v40  ;;  %v352_v61 = vmul.f32 %v2471_v19, %v2471_v19 }
  0xd0   :  { %v2474_v21 = vpop.f32.mrf.mxu0  ;;  %v2476_v22 = vpop.f32.mrf.mxu1  ;;  %v363_v1 = vadd.f32 %v362_v62, %v348_v0  ;;  %v323_v62 = vld [vmem:[%s3173_s3 + $0x10] sm:$0xff]  ;;  %v317_v0 = vld [vmem:[%s3172_s2] sm:$0xff] }
  0xd1   :  { %v335_v23 = vadd.f32 %v2474_v21, %v2469_v18  ;;  %v354_v24 = vmul.f32 %v2474_v21, %v2474_v21  ;;  %v332_v25 = vadd.f32 %v331_v20, %v2471_v19  ;;  %v355_v31 = vmul.f32 %v2476_v22, %v2476_v22 }
  0xd2   :  { %v2485_v27 = vpop.f32.mrf.mxu0  ;;  %v2487_v28 = vpop.f32.mrf.mxu1  ;;  %v367_v59 = vadd.f32 %v366_v48, %v351_v47 }
  0xd3   :  { %333 = vadd.xlane.f32.xlu1 %v332_v25  ;;  %v336_v29 = vadd.f32 %v335_v23, %v2476_v22  ;;  %v357_v32 = vmul.f32 %v2485_v27, %v2485_v27  ;;  %v371_v35 = vadd.f32 %v354_v24, %v353_v26  ;;  %v356_v55 = vmul.f32 %v2487_v28, %v2487_v28 }
  0xd4   :  { %v2496_v33 = vpop.f32.mrf.mxu0  ;;  %v2498_v34 = vpop.f32.mrf.mxu1  ;;  %v368_v63 = vadd.f32 %v367_v59, %v352_v61 }
  0xd5   :  { %v340_v36 = vadd.f32 %v2496_v33, %v2485_v27  ;;  %v358_v37 = vmul.f32 %v2496_v33, %v2496_v33  ;;  %v359_v38 = vmul.f32 %v2498_v34, %v2498_v34  ;;  %v337_v39 = vadd.f32 %v336_v29, %v2487_v28 }
  0xd6   :  { %v2509_v41 = vpop.f32.mrf.mxu1  ;;  %v372_v52 = vadd.f32 %v371_v35, %v355_v31 }
  0xd7   :  { %338 = vadd.xlane.f32.xlu0 %v337_v39  ;;  %v341_v44 = vadd.f32 %v340_v36, %v2498_v34  ;;  %v376_v45 = vadd.f32 %v358_v37, %v357_v32  ;;  %v360_v50 = vmul.f32 %v2509_v41, %v2509_v41 }
  0xd8   :  { %v373_v58 = vadd.f32 %v372_v52, %v356_v55 }
  0xd9   :  { %v342_v49 = vadd.f32 %v341_v44, %v2509_v41  ;;  %v377_v51 = vadd.f32 %v376_v45, %v359_v38 }
  0xdb   :  { %343 = vadd.xlane.f32.xlu0 %v342_v49  ;;  %v378_v54 = vadd.f32 %v377_v51, %v360_v50  ;;  %v320_v51 = vld [vmem:[%s3172_s2 + $0x18] sm:$0xff] }
  0xdd   :  { %379 = vadd.xlane.f32.xlu1 %v378_v54  ;;  %v319_v54 = vld [vmem:[%s3172_s2 + $0x10] sm:$0xff] }
  0xdf   :  { %374 = vadd.xlane.f32.xlu0 %v373_v58  ;;  %v324_v58 = vld [vmem:[%s3173_s3 + $0x18] sm:$0xff] }
  0xe1   :  { %328 = vadd.xlane.f32.xlu1 %v327_v60  ;;  %v318_v60 = vld [vmem:[%s3172_s2 + $0x8] sm:$0xff] }
  0xe3   :  { %369 = vadd.xlane.f32.xlu0 %v368_v63 }
  0xe5   :  { %364 = vadd.xlane.f32.xlu1 %v363_v1 }
 0x15c   :  { %v334_v5 = vpop.xlane.xlu1 %333 }
 0x15d   :  { %v2539_v23 = vmul.f32 0.001953125, %v334_v5 }
 0x15f   :  { %v390_v35 = vmul.f32 %v2539_v23, %v2539_v23 }
 0x160   :  { %v339_v4 = vpop.xlane.xlu0 %338 }
 0x161   :  { %v2533_v7 = vmul.f32 0.001953125, %v339_v4  ;;  %v321_v4 = vld [vmem:[%s3173_s3] sm:$0xff] }
 0x163   :  { %v391_v26 = vmul.f32 %v2533_v7, %v2533_v7 }
 0x164   :  { %v344_v6 = vpop.xlane.xlu0 %343 }
 0x165   :  { %v2535_v8 = vmul.f32 0.001953125, %v344_v6 }
 0x166   :  { %v380_v9 = vpop.xlane.xlu1 %379 }
 0x167   :  { %v388_v17 = vmul.f32 0.001953125, %v380_v9  ;;  %v392_v20 = vmul.f32 %v2535_v8, %v2535_v8  ;;  %v425_v9 = vsub.f32 %v2485_v27, %v2535_v8 }
 0x168   :  { %v375_v24 = vpop.xlane.xlu0 %374 }
 0x169   :  { %v396_v25 = vsub.f32 %v388_v17, %v392_v20  ;;  %v387_v29 = vmul.f32 0.001953125, %v375_v24  ;;  %v426_v17 = vsub.f32 %v2496_v33, %v2535_v8  ;;  %v427_v20 = vsub.f32 %v2498_v34, %v2535_v8 }
 0x16a   :  { %v329_v30 = vpop.xlane.xlu1 %328  ;;  %v428_v24 = vsub.f32 %v2509_v41, %v2535_v8  ;;  %v421_v41 = vsub.f32 %v2469_v18, %v2533_v7  ;;  %v422_v8 = vsub.f32 %v2474_v21, %v2533_v7 }
 0x16b   :  { %v400_v31 = vmax.f32 %v396_v25, 0.0  ;;  %v395_v32 = vsub.f32 %v387_v29, %v391_v26  ;;  %v2545_v39 = vmul.f32 0.001953125, %v329_v30 }
 0x16c   :  { %v370_v36 = vpop.xlane.xlu0 %369 }
 0x16d   :  { %v404_v37 = vadd.f32 1e-05, %v400_v31  ;;  %v399_v38 = vmax.f32 %v395_v32, 0.0  ;;  %v386_v40 = vmul.f32 0.001953125, %v370_v36  ;;  %v389_v47 = vmul.f32 %v2545_v39, %v2545_v39 }
 0x16e   :  { %v365_v42 = vpop.xlane.xlu1 %364 }
 0x16f   :  { %2279 = vrsqrt.f32 %v404_v37  ;;  %v403_v43 = vadd.f32 1e-05, %v399_v38  ;;  %v394_v44 = vsub.f32 %v386_v40, %v390_v35  ;;  %v385_v45 = vmul.f32 0.001953125, %v365_v42 }
 0x170   :  { %v423_v42 = vsub.f32 %v2476_v22, %v2533_v7 }
 0x171   :  { %2281 = vrsqrt.f32 %v403_v43  ;;  %v398_v46 = vmax.f32 %v394_v44, 0.0  ;;  %v393_v49 = vsub.f32 %v385_v45, %v389_v47  ;;  %v424_v43 = vsub.f32 %v2487_v28, %v2533_v7 }
 0x173   :  { %v402_v48 = vadd.f32 1e-05, %v398_v46  ;;  %v397_v50 = vmax.f32 %v393_v49, 0.0 }
 0x175   :  { %2283 = vrsqrt.f32 %v402_v48  ;;  %v401_v52 = vadd.f32 1e-05, %v397_v50 }
 0x177   :  { %2285 = vrsqrt.f32 %v401_v52 }
 0x17c   :  { %v2280_v53 = vpop.eup %2279 }
 0x17d   :  { %v412_v55 = vmul.f32 %v2280_v53, %v320_v51  ;;  %v417_v53 = vsub.f32 %v2459_v13, %v2539_v23  ;;  %v413_v13 = vsub.f32 %v2453_v10, %v2545_v39 }
 0x17e   :  { %v2282_v56 = vpop.eup %2281 }
 0x17f   :  { %446 = vperm.xlu0 %2277, %v412_v55   ;;  %v411_v57 = vmul.f32 %v2282_v56, %v319_v54  ;;  %v418_v54 = vsub.f32 %v2463_v15, %v2539_v23  ;;  %v419_v55 = vsub.f32 %v2465_v16, %v2539_v23  ;;  %v420_v56 = vsub.f32 %v2471_v19, %v2539_v23 }
 0x180   :  { %v414_v15 = vsub.f32 %v2455_v11, %v2545_v39  ;;  %v415_v16 = vsub.f32 %v2457_v12, %v2545_v39 }
 0x181   :  { %441 = vperm.xlu1 %2278, %v411_v57  }
 0x182   :  { %v2284_v59 = vpop.eup %2283 }
 0x183   :  { %v410_v61 = vmul.f32 %v2284_v59, %v318_v60 }
 0x184   :  { %v2286_v63 = vpop.eup %2285 }
 0x185   :  { %482 = vperm.xlu1 %2278, %v324_v58   ;;  %v409_v1 = vmul.f32 %v2286_v63, %v317_v0  ;;  %v416_v0 = vsub.f32 %v2461_v14, %v2545_v39 }
 0x189   :  { %436 = vperm.xlu1 %2278, %v410_v61  }
 0x18d   :  { %477 = vperm.xlu1 %2278, %v323_v62  }
 0x191   :  { %431 = vperm.xlu1 %2278, %v409_v1  }
 0x195   :  { %472 = vperm.xlu1 %2278, %v322_v2  }
 0x199   :  { %467 = vperm.xlu1 %2278, %v321_v4  }
 0x1fa   :  { %v447_v5 = vpop.permute.xlu0 %446 }
 0x1fb   :  { %v461_v25 = vmul.f32 %v447_v5, %v425_v9  ;;  %v462_v26 = vmul.f32 %v447_v5, %v426_v17  ;;  %v463_v29 = vmul.f32 %v447_v5, %v427_v20  ;;  %v464_v30 = vmul.f32 %v447_v5, %v428_v24 }
 0x1fc   :  { %v442_v6 = vpop.permute.xlu1 %441 }
 0x1fd   :  { %v457_v44 = vmul.f32 %v442_v6, %v421_v41  ;;  %v458_v45 = vmul.f32 %v442_v6, %v422_v8  ;;  %v459_v46 = vmul.f32 %v442_v6, %v423_v42  ;;  %v460_v47 = vmul.f32 %v442_v6, %v424_v43 }
 0x200   :  { %v483_v31 = vpop.permute.xlu1 %482 }
 0x201   :  { %v497_v32 = vadd.f32 %v483_v31, %v461_v25  ;;  %v499_v35 = vadd.f32 %v483_v31, %v463_v29  ;;  %v498_v36 = vadd.f32 %v483_v31, %v462_v26  ;;  %v500_v37 = vadd.f32 %v483_v31, %v464_v30  ;;  %v517_v30 = vld [vmem:[%s3174_s4] sm:$0xff]  ;;  %v518_v31 = vld [vmem:[%s3174_s4 + $0x8] sm:$0xff] }
 0x203   :  { %v2581_v38 = vmax.f32 %v497_v32, 0.0  ;;  %v2583_v27 = vmax.f32 %v499_v35, 0.0  ;;  %v2585_v33 = vmax.f32 %v498_v36, 0.0  ;;  %v2587_v40 = vmax.f32 %v500_v37, 0.0  ;;  %v521_v32 = vld [vmem:[%s3174_s4 + $0x20] sm:$0xff]  ;;  %v522_v35 = vld [vmem:[%s3174_s4 + $0x28] sm:$0xff] }
 0x204   :  { %v437_v34 = vpop.permute.xlu1 %436  ;;  %v519_v36 = vld [vmem:[%s3174_s4 + $0x10] sm:$0xff]  ;;  %v520_v37 = vld [vmem:[%s3174_s4 + $0x18] sm:$0xff]  ;;  %s2340_s4 = smov 127  }
 0x205   :  { %554 = vmatprep.subr.mxu0 %v2585_v33  ;;  %631 = vmatprep.subr.mxu1 %v2587_v40  ;;  %v453_v57 = vmul.f32 %v437_v34, %v417_v53  ;;  %v454_v58 = vmul.f32 %v437_v34, %v418_v54  ;;  %v455_v59 = vmul.f32 %v437_v34, %v419_v55 }
 0x206   :  { %555 = vmatpush1.msra.mxu0 %v2581_v38  ;;  %632 = vmatpush1.msra.mxu1 %v2583_v27  ;;  %v456_v60 = vmul.f32 %v437_v34, %v420_v56 }
 0x208   :  { %v478_v18 = vpop.permute.xlu1 %477 }
 0x209   :  { %v493_v21 = vadd.f32 %v478_v18, %v457_v44  ;;  %v495_v48 = vadd.f32 %v478_v18, %v459_v46  ;;  %v494_v49 = vadd.f32 %v478_v18, %v458_v45  ;;  %v496_v22 = vadd.f32 %v478_v18, %v460_v47 }
 0x20b   :  { %v2601_v50 = vmax.f32 %v493_v21, 0.0  ;;  %v2603_v28 = vmax.f32 %v495_v48, 0.0  ;;  %v2605_v7 = vmax.f32 %v494_v49, 0.0  ;;  %v2607_v51 = vmax.f32 %v496_v22, 0.0 }
 0x20c   :  { %v432_v52 = vpop.permute.xlu1 %431 }
 0x20d   :  { %556 = vmatprep.subr.mxu0 %v2605_v7  ;;  %633 = vmatprep.subr.mxu1 %v2607_v51  ;;  %v449_v1 = vmul.f32 %v432_v52, %v413_v13  ;;  %v450_v2 = vmul.f32 %v432_v52, %v414_v15  ;;  %v451_v4 = vmul.f32 %v432_v52, %v415_v16 }
 0x20e   :  { %557 = vmatpush1.msra.mxu0 %v2601_v50  ;;  %634 = vmatpush1.msra.mxu1 %v2603_v28  ;;  %v452_v17 = vmul.f32 %v432_v52, %v416_v0 }
 0x210   :  { %v473_v19 = vpop.permute.xlu1 %472 }
 0x211   :  { %v489_v23 = vadd.f32 %v473_v19, %v453_v57  ;;  %v491_v61 = vadd.f32 %v473_v19, %v455_v59  ;;  %v490_v62 = vadd.f32 %v473_v19, %v454_v58  ;;  %v492_v63 = vadd.f32 %v473_v19, %v456_v60 }
 0x213   :  { %v505_v5 = vmax.f32 %v489_v23, 0.0  ;;  %v507_v6 = vmax.f32 %v491_v61, 0.0  ;;  %v506_v10 = vmax.f32 %v490_v62, 0.0  ;;  %v508_v9 = vmax.f32 %v492_v63, 0.0 }
 0x214   :  { %v468_v11 = vpop.permute.xlu1 %467 }
 0x215   :  { %v485_v20 = vadd.f32 %v468_v11, %v449_v1  ;;  %v487_v24 = vadd.f32 %v468_v11, %v451_v4  ;;  %558 = vmatprep.subr.mxu0 %v506_v10  ;;  %635 = vmatprep.subr.mxu1 %v508_v9  ;;  %v486_v12 = vadd.f32 %v468_v11, %v450_v2 }
 0x216   :  { %559 = vmatpush1.msra.mxu0 %v505_v5  ;;  %636 = vmatpush1.msra.mxu1 %v507_v6  ;;  %v488_v25 = vadd.f32 %v468_v11, %v452_v17 }
 0x217   :  { %v501_v26 = vmax.f32 %v485_v20, 0.0  ;;  %v503_v29 = vmax.f32 %v487_v24, 0.0  ;;  %v502_v14 = vmax.f32 %v486_v12, 0.0 }
 0x218   :  { %v504_v39 = vmax.f32 %v488_v25, 0.0 }
 0x219   :  { %560 = vmatprep.subr.mxu0 %v502_v14 }
 0x21a   :  { %637 = vmatprep.subr.mxu1 %v504_v39  ;;  %561 = vmatpush1.msra.mxu0 %v501_v26 }
 0x21b   :  { %638 = vmatpush1.msra.mxu1 %v503_v29  ;;  %2225 = vmatmul.mubr.msk.f32.vlgmr.msra.gmra.mxu0 %vm523_vm2, %v517_v30 }
 0x21c   :  { %2227 = vmatmul.mubr.msk.f32.vlgmr.msra.gmra.mxu1 %vm523_vm2, %v517_v30  ;;  %714 = vmatprep.subr.mxu0 %v2585_v33 }
 0x21d   :  { %791 = vmatprep.subr.mxu1 %v2587_v40  ;;  %715 = vmatpush1.msra.mxu0 %v2581_v38 }
 0x21e   :  { %792 = vmatpush1.msra.mxu1 %v2583_v27  ;;  %716 = vmatprep.subr.mxu0 %v2605_v7 }
 0x21f   :  { %793 = vmatprep.subr.mxu1 %v2607_v51  ;;  %677 = vmatprep.mubr.f32.mxu1 %v2337_v3 }
 0x220   :  { %717 = vmatpush1.msra.mxu0 %v2601_v50  ;;  %794 = vmatpush1.msra.mxu1 %v2603_v28 }
 0x221   :  { %600 = vmatprep.mubr.f32.mxu0 %v2337_v3  ;;  %2228 = vmatmul.mubr.msk.f32.gmra.mxu1 %vm523_vm2, %v518_v31 }
 0x222   :  { %718 = vmatprep.subr.mxu0 %v506_v10  ;;  %795 = vmatprep.subr.mxu1 %v508_v9 }
 0x223   :  { %2226 = vmatmul.mubr.msk.f32.gmra.mxu0 %vm523_vm2, %v518_v31  ;;  %796 = vmatpush1.msra.mxu1 %v507_v6 }
 0x224   :  { %719 = vmatpush1.msra.mxu0 %v505_v5  ;;  %797 = vmatprep.subr.mxu1 %v504_v39 }
 0x225   :  { %720 = vmatprep.subr.mxu0 %v502_v14  ;;  %798 = vmatpush1.msra.mxu1 %v503_v29 }
 0x226   :  { %721 = vmatpush1.msra.mxu0 %v501_v26  ;;  %754 = vmatprep.mubr.f32.mxu0 %v2337_v3 }
 0x227   :  { %831 = vmatprep.mubr.f32.mxu1 %v2337_v3  ;;  %915 = vmatprep.subr.mxu0 %v2585_v33 }
 0x228   :  { %992 = vmatprep.subr.mxu1 %v2587_v40  ;;  %2229 = vmatmul.mubr.msk.f32.vlgmr.msra.gmra.mxu0 %vm523_vm2, %v521_v32 }
 0x229   :  { %2231 = vmatmul.mubr.msk.f32.vlgmr.msra.gmra.mxu1 %vm523_vm2, %v521_v32  ;;  %916 = vmatpush1.msra.mxu0 %v2581_v38 }
 0x22a   :  { %993 = vmatpush1.msra.mxu1 %v2583_v27  ;;  %917 = vmatprep.subr.mxu0 %v2605_v7 }
 0x22b   :  { %994 = vmatprep.subr.mxu1 %v2607_v51  ;;  %918 = vmatpush1.msra.mxu0 %v2601_v50 }
 0x22c   :  { %995 = vmatpush1.msra.mxu1 %v2603_v28  ;;  %919 = vmatprep.subr.mxu0 %v506_v10  ;;  %v44_v28 = vlaneseq }
 0x22d   :  { %996 = vmatprep.subr.mxu1 %v508_v9  ;;  %920 = vmatpush1.msra.mxu0 %v505_v5 }
 0x22e   :  { %997 = vmatpush1.msra.mxu1 %v507_v6  ;;  %921 = vmatprep.subr.mxu0 %v502_v14  ;;  %v2704_v52 = vand.u32 127, %v44_v28  ;;  %vm2196_vm14 = vcmp.lt.s32.totalorder %v44_v28, 512 }
 0x22f   :  { %998 = vmatprep.subr.mxu1 %v504_v39  ;;  %922 = vmatpush1.msra.mxu0 %v501_v26 }
 0x230   :  { %999 = vmatpush1.msra.mxu1 %v503_v29  ;;  %837 = vmatprep.mubr.f32.mxu1 %v2337_v3  ;;  %v53_v54 = vand.u32 255, %v2704_v52  ;;  %v46_v55 = vadd.s32 128, %v2704_v52  ;;  %vm860_vm3 = vcmp.lt.s32.totalorder %v2704_v52, 1  ;;  %v47_v56 = vadd.s32 256, %v2704_v52 }
 0x231   :  { %2232 = vmatmul.mubr.msk.f32.gmra.mxu1 %vm523_vm2, %v522_v35  ;;  %760 = vmatprep.mubr.f32.mxu0 %v2337_v3  ;;  %v48_v62 = vadd.s32 384, %v2704_v52  ;;  %vm1061_vm5 = vcmp.lt.s32.totalorder %v2704_v52, 127 }
 0x232   :  { %2230 = vmatmul.mubr.msk.f32.gmra.mxu0 %vm523_vm2, %v522_v35  ;;  %1032 = vmatprep.mubr.f32.mxu1 %v2337_v3  ;;  %vm2712_vm4 = vcmp.eq.s32.totalorder %v53_v54, 0  ;;  %v60_v16 = vand.u32 255, %v46_v55  ;;  %v67_v19 = vand.u32 255, %v47_v56 }
 0x233   :  { %955 = vmatprep.mubr.f32.mxu0 %v2337_v3  ;;  %v74_v20 = vand.u32 255, %v48_v62  ;;  %vm2241_vm11 = vmneg %vm2712_vm4 }
 0x234   :  { %vm2726_vm6 = vcmp.eq.s32.totalorder %v60_v16, 255  ;;  %vm2730_vm7 = vcmp.eq.s32.totalorder %v67_v19, 0 }
 0x235   :  { %2235 = vmatmul.mubr.msk.f32.vlgmr.msra.gmra.mxu1 %vm523_vm2, %v519_v36  ;;  %vm2767_vm8 = vcmp.eq.s32.totalorder %v74_v20, 255  ;;  %vm2237_vm9 = vmneg %vm2726_vm6 }
 0x236   :  { %2233 = vmatmul.mubr.msk.f32.vlgmr.msra.gmra.mxu0 %vm523_vm2, %v519_v36  ;;  %1038 = vmatprep.mubr.f32.mxu1 %v2337_v3  ;;  %vm2249_vm10 = vmneg %vm2767_vm8 }
 0x237   :  { %961 = vmatprep.mubr.f32.mxu0 %v2337_v3  ;;  %vm2253_vm13 = vmneg %vm2730_vm7 }
 0x239   :  { %2236 = vmatmul.mubr.msk.f32.gmra.mxu1 %vm523_vm2, %v520_v37 }
 0x23a   :  { %2234 = vmatmul.mubr.msk.f32.gmra.mxu0 %vm523_vm2, %v520_v37  ;;  %1428 = vmatprep.mubr.f32.mxu1 %v2337_v3 }
 0x23b   :  { %1339 = vmatprep.mubr.f32.mxu0 %v2337_v3 }
 0x2db   :  { %v596_v38 = vpop.f32.mrf.mxu0 }
 0x2dc   :  { %v673_v27 = vpop.f32.mrf.mxu1  ;;  %844 = vrot.lane.b32.xlu0 %v596_v38, %s2339_s23 }
 0x2dd   :  { %852 = vrot.lane.b32.xlu1 %v673_v27, %s2339_s23  ;;  %v598_v40 = vpop.f32.mrf.mxu0 }
 0x2de   :  { %v675_v33 = vpop.f32.mrf.mxu1 }
 0x2e0   :  { %856 = vrot.lane.b32.xlu0 %v675_v33, %s2339_s23 }
 0x2e1   :  { %v679_v34 = vpop.f32.mrf.mxu1  ;;  %848 = vrot.lane.b32.xlu1 %v598_v40, %s2339_s23 }
 0x2e3   :  { %v602_v41 = vpop.f32.mrf.mxu0  ;;  %v681_v8 = vpop.f32.mrf.mxu1 }
 0x2e4   :  { %858 = vrot.lane.b32.xlu0 %v681_v8, %s2339_s23 }
 0x2e5   :  { %v604_v42 = vpop.f32.mrf.mxu0  ;;  %846 = vrot.lane.b32.xlu1 %v602_v41, %s2339_s23 }
 0x2e8   :  { %v756_v43 = vpop.f32.mrf.mxu0 }
 0x2e9   :  { %854 = vrot.lane.b32.xlu1 %v679_v34, %s2339_s23  ;;  %1045 = vrot.lane.b32.xlu0 %v756_v43, %s2340_s4  ;;  %v833_v44 = vpop.f32.mrf.mxu1 }
 0x2ea   :  { %v758_v45 = vpop.f32.mrf.mxu0 }
 0x2eb   :  { %v835_v46 = vpop.f32.mrf.mxu1 }
 0x2ed   :  { %850 = vrot.lane.b32.xlu1 %v604_v42, %s2339_s23  ;;  %1049 = vrot.lane.b32.xlu0 %v758_v45, %s2340_s4 }
 0x2f1   :  { %v839_v47 = vpop.f32.mrf.mxu1  ;;  %1053 = vrot.lane.b32.xlu1 %v833_v44, %s2340_s4 }
 0x2f2   :  { %1055 = vrot.lane.b32.xlu0 %v839_v47, %s2340_s4  ;;  %v762_v18 = vpop.f32.mrf.mxu0 }
 0x2f3   :  { %v841_v48 = vpop.f32.mrf.mxu1 }
 0x2f4   :  { %v764_v21 = vpop.f32.mrf.mxu0 }
 0x2f5   :  { %1051 = vrot.lane.b32.xlu1 %v764_v21, %s2340_s4  ;;  %v1034_v59 = vpop.f32.mrf.mxu1 }
 0x2f6   :  { %1047 = vrot.lane.b32.xlu0 %v762_v18, %s2340_s4  ;;  %v957_v60 = vpop.f32.mrf.mxu0 }
 0x2f7   :  { %v1036_v63 = vpop.f32.mrf.mxu1 }
 0x2f8   :  { %v959_v2 = vpop.f32.mrf.mxu0 }
 0x2f9   :  { %1059 = vrot.lane.b32.xlu1 %v841_v48, %s2340_s4  ;;  %v1040_v5 = vpop.f32.mrf.mxu1 }
 0x2fa   :  { %1057 = vrot.lane.b32.xlu0 %v835_v46, %s2340_s4  ;;  %v963_v17 = vpop.f32.mrf.mxu0 }
 0x2fb   :  { %v1042_v38 = vpop.f32.mrf.mxu1 }
 0x2fc   :  { %v965_v31 = vpop.f32.mrf.mxu0 }
 0x34e   :  { %v845_v49 = vpop.permute.xlu0 %844 }
 0x34f   :  { %v853_v22 = vpop.permute.xlu1 %852 }
 0x352   :  { %v857_v50 = vpop.permute.xlu0 %856 }
 0x353   :  { %v849_v7 = vpop.permute.xlu1 %848  ;;  %v867_v15 = vsel %vm860_vm3, %v857_v50, %v845_v49  ;;  %v861_v35 = vsel %vm860_vm3, %v853_v22, %v857_v50 }
 0x354   :  { %v877_v0 = vsel %vm2712_vm4, 0.0, %v867_v15  ;;  %v865_v1 = vsel %vm860_vm3, %v845_v49, %v849_v7  ;;  %v863_v9 = vsel %vm860_vm3, %v849_v7, %v853_v22  ;;  %v1037_v44 = vadd.f32 %v1036_v63, %v861_v35 }
 0x355   :  { %v958_v24 = vadd.f32 %v957_v60, %v877_v0  ;;  %v960_v12 = vadd.f32 %v959_v2, %v865_v1  ;;  %v879_v36 = vsel %vm2730_vm7, 0.0, %v863_v9 }
 0x356   :  { %v859_v51 = vpop.permute.xlu0 %858  ;;  %v1035_v18 = vadd.f32 %v1034_v59, %v879_v36 }
 0x357   :  { %v847_v53 = vpop.permute.xlu1 %846 }
 0x358   :  { %v868_v4 = vsel %vm860_vm3, %v859_v51, %v847_v53 }
 0x359   :  { %v881_v14 = vsel %vm2712_vm4, 0.0, %v868_v4 }
 0x35a   :  { %v964_v34 = vadd.f32 %v963_v17, %v881_v14 }
 0x35b   :  { %v855_v57 = vpop.permute.xlu1 %854  ;;  %v2710_v58 = vpop.permute.xlu0 %1045 }
 0x35c   :  { %v862_v37 = vsel %vm860_vm3, %v855_v57, %v859_v51 }
 0x35d   :  { %v1043_v21 = vadd.f32 %v1042_v38, %v862_v37 }
 0x35f   :  { %v851_v23 = vpop.permute.xlu1 %850  ;;  %v1050_v61 = vpop.permute.xlu0 %1049 }
 0x360   :  { %v1066_v25 = vsel %vm1061_vm5, %v2710_v58, %v1050_v61  ;;  %v864_v39 = vsel %vm860_vm3, %v851_v23, %v855_v57  ;;  %v866_v30 = vsel %vm860_vm3, %v847_v53, %v851_v23 }
 0x361   :  { %v2755_v27 = vadd.f32 %v1066_v25, %v958_v24  ;;  %v883_v41 = vsel %vm2730_vm7, 0.0, %v864_v39  ;;  %v966_v8 = vadd.f32 %v965_v31, %v866_v30 }
 0x362   :  { %v1041_v22 = vadd.f32 %v1040_v5, %v883_v41 }
 0x363   :  { %v1054_v11 = vpop.permute.xlu1 %1053  ;;  %v1108_v50 = vmul.f32 %v2755_v27, %v2755_v27 }
 0x364   :  { %v1064_v26 = vsel %vm1061_vm5, %v1050_v61, %v1054_v11  ;;  %v1056_v29 = vpop.permute.xlu0 %1055 }
 0x365   :  { %v1079_v32 = vsel %vm2726_vm6, 0.0, %v1064_v26 }
 0x366   :  { %v2757_v33 = vadd.f32 %v1079_v32, %v960_v12 }
 0x367   :  { %v1052_v40 = vpop.permute.xlu1 %1051 }
 0x368   :  { %v1048_v42 = vpop.permute.xlu0 %1047  ;;  %v1065_v43 = vsel %vm1061_vm5, %v1052_v40, %v1056_v29  ;;  %v1098_v51 = vadd.f32 %v2757_v33, %v2755_v27  ;;  %v1109_v53 = vmul.f32 %v2757_v33, %v2757_v33 }
 0x369   :  { %v1067_v45 = vsel %vm1061_vm5, %v1048_v42, %v1052_v40  ;;  %v1083_v46 = vsel %vm2726_vm6, 0.0, %v1065_v43 }
 0x36a   :  { %v2771_v48 = vadd.f32 %v1067_v45, %v964_v34  ;;  %v2773_v49 = vadd.f32 %v1083_v46, %v966_v8  ;;  %v1116_v5 = vadd.f32 %v1109_v53, %v1108_v50  ;;  %v1094_v45 = vld [vmem:[%s3175_s5] sm:$0xff]  ;;  %v1095_v46 = vld [vmem:[%s3175_s5 + $0x8] sm:$0xff] }
 0x36b   :  { %v1060_v7 = vpop.permute.xlu1 %1059 }
 0x36c   :  { %v1112_v54 = vmul.f32 %v2771_v48, %v2771_v48  ;;  %v1058_v55 = vpop.permute.xlu0 %1057  ;;  %v1063_v56 = vsel %vm1061_vm5, %v1056_v29, %v1060_v7  ;;  %v1069_v57 = vsel %vm1061_vm5, %v1060_v7, %v1048_v42  ;;  %v1103_v59 = vadd.f32 %v2773_v49, %v2771_v48  ;;  %v1097_v7 = vld [vmem:[%s3176_s6 + $0x8] sm:$0xff] }
 0x36d   :  { %v1062_v60 = vsel %vm1061_vm5, %v1054_v11, %v1058_v55  ;;  %v1068_v15 = vsel %vm1061_vm5, %v1058_v55, %v2710_v58  ;;  %v1085_v16 = vsel %vm2767_vm8, 0.0, %v1069_v57  ;;  %v2796_v19 = vadd.f32 %v1063_v56, %v1041_v22 }
 0x36e   :  { %v1081_v23 = vsel %vm2767_vm8, 0.0, %v1068_v15  ;;  %v1088_v61 = vadd.f32 %v1062_v60, %v1035_v18  ;;  %v2800_v62 = vadd.f32 %v1085_v16, %v1043_v21  ;;  %v1113_v63 = vmul.f32 %v2773_v49, %v2773_v49 }
 0x36f   :  { %v2804_v0 = vadd.f32 %v1081_v23, %v1037_v44  ;;  %v1104_v1 = vadd.f32 %v1103_v59, %v2796_v19  ;;  %v1114_v58 = vmul.f32 %v2796_v19, %v2796_v19 }
 0x370   :  { %v1099_v2 = vadd.f32 %v1098_v51, %v1088_v61  ;;  %v1110_v4 = vmul.f32 %v1088_v61, %v1088_v61  ;;  %v1121_v9 = vadd.f32 %v1113_v63, %v1112_v54  ;;  %v1115_v12 = vmul.f32 %v2800_v62, %v2800_v62  ;;  %v1096_v51 = vld [vmem:[%s3176_s6] sm:$0xff] }
 0x371   :  { %v1105_v17 = vadd.f32 %v1104_v1, %v2800_v62  ;;  %v1111_v11 = vmul.f32 %v2804_v0, %v2804_v0 }
 0x372   :  { %v1100_v20 = vadd.f32 %v1099_v2, %v2804_v0  ;;  %v1117_v24 = vadd.f32 %v1116_v5, %v1110_v4  ;;  %v1122_v25 = vadd.f32 %v1121_v9, %v1114_v58 }
 0x373   :  { %1106 = vadd.xlane.f32.xlu1 %v1105_v17 }
 0x374   :  { %1101 = vadd.xlane.f32.xlu0 %v1100_v20  ;;  %v1118_v26 = vadd.f32 %v1117_v24, %v1111_v11  ;;  %v1123_v29 = vadd.f32 %v1122_v25, %v1115_v12 }
 0x377   :  { %1119 = vadd.xlane.f32.xlu1 %v1118_v26 }
 0x378   :  { %1124 = vadd.xlane.f32.xlu0 %v1123_v29 }
 0x3fc   :  { %v1107_v14 = vpop.xlane.xlu1 %1106 }
 0x3fd   :  { %v1102_v39 = vpop.xlane.xlu0 %1101  ;;  %v2815_v30 = vmul.f32 0.001953125, %v1107_v14 }
 0x3fe   :  { %v1126_v31 = vmul.f32 0.001953125, %v1102_v39 }
 0x3ff   :  { %v1131_v38 = vmul.f32 %v2815_v30, %v2815_v30  ;;  %v1147_v15 = vsub.f32 %v2773_v49, %v2815_v30  ;;  %v1146_v49 = vsub.f32 %v2771_v48, %v2815_v30  ;;  %v1148_v17 = vsub.f32 %v2796_v19, %v2815_v30 }
 0x400   :  { %v1120_v32 = vpop.xlane.xlu1 %1119  ;;  %v1130_v36 = vmul.f32 %v1126_v31, %v1126_v31  ;;  %v1143_v55 = vsub.f32 %v2757_v33, %v1126_v31  ;;  %v1144_v56 = vsub.f32 %v1088_v61, %v1126_v31  ;;  %v1142_v57 = vsub.f32 %v2755_v27, %v1126_v31 }
 0x401   :  { %v1128_v35 = vmul.f32 0.001953125, %v1120_v32  ;;  %v1125_v37 = vpop.xlane.xlu0 %1124  ;;  %v1145_v4 = vsub.f32 %v2804_v0, %v1126_v31  ;;  %v1149_v25 = vsub.f32 %v2800_v62, %v2815_v30 }
 0x402   :  { %v1129_v40 = vmul.f32 0.001953125, %v1125_v37 }
 0x403   :  { %v1132_v34 = vsub.f32 %v1128_v35, %v1130_v36 }
 0x404   :  { %v1133_v41 = vsub.f32 %v1129_v40, %v1131_v38 }
 0x405   :  { %v1134_v8 = vmax.f32 %v1132_v34, 0.0 }
 0x406   :  { %v1135_v42 = vmax.f32 %v1133_v41, 0.0 }
 0x407   :  { %v1136_v43 = vadd.f32 1e-05, %v1134_v8 }
 0x408   :  { %v1137_v44 = vadd.f32 1e-05, %v1135_v42 }
 0x409   :  { %2287 = vrsqrt.f32 %v1136_v43 }
 0x40a   :  { %2289 = vrsqrt.f32 %v1137_v44 }
 0x416   :  { %v2288_v18 = vpop.eup %2287 }
 0x417   :  { %v2290_v21 = vpop.eup %2289  ;;  %v1140_v22 = vmul.f32 %v2288_v18, %v1094_v45 }
 0x418   :  { %v1141_v50 = vmul.f32 %v2290_v21, %v1095_v46 }
 0x419   :  { %1152 = vperm.xlu1 %2278, %v1140_v22  }
 0x41a   :  { %1157 = vperm.xlu0 %2277, %v1141_v50  }
 0x41d   :  { %1175 = vperm.xlu1 %2278, %v1097_v7  }
 0x41e   :  { %1170 = vperm.xlu0 %2277, %v1096_v51  }
 0x494   :  { %v1153_v53 = vpop.permute.xlu1 %1152 }
 0x495   :  { %v1158_v54 = vpop.permute.xlu0 %1157  ;;  %v1161_v59 = vmul.f32 %v1153_v53, %v1143_v55  ;;  %v1162_v60 = vmul.f32 %v1153_v53, %v1144_v56  ;;  %v1160_v63 = vmul.f32 %v1153_v53, %v1142_v57  ;;  %v1163_v27 = vmul.f32 %v1153_v53, %v1145_v4  ;;  %v1258_v57 = vld [vmem:[%s3177_s7] sm:$0xff]  ;;  %v1261_v4 = vld [vmem:[%s3177_s7 + $0x18] sm:$0xff] }
 0x496   :  { %v1165_v1 = vmul.f32 %v1158_v54, %v1147_v15  ;;  %v1164_v24 = vmul.f32 %v1158_v54, %v1146_v49  ;;  %v1166_v12 = vmul.f32 %v1158_v54, %v1148_v17  ;;  %v1167_v39 = vmul.f32 %v1158_v54, %v1149_v25 }
 0x498   :  { %v1176_v16 = vpop.permute.xlu1 %1175 }
 0x499   :  { %v1171_v23 = vpop.permute.xlu0 %1170  ;;  %v1183_v33 = vadd.f32 %v1176_v16, %v1165_v1  ;;  %v1182_v29 = vadd.f32 %v1176_v16, %v1164_v24  ;;  %v1184_v14 = vadd.f32 %v1176_v16, %v1166_v12  ;;  %v1185_v31 = vadd.f32 %v1176_v16, %v1167_v39 }
 0x49a   :  { %v1180_v58 = vadd.f32 %v1171_v23, %v1162_v60  ;;  %v1179_v2 = vadd.f32 %v1171_v23, %v1161_v59  ;;  %v1178_v61 = vadd.f32 %v1171_v23, %v1160_v63  ;;  %v1181_v20 = vadd.f32 %v1171_v23, %v1163_v27  ;;  %v1259_v63 = vld [vmem:[%s3177_s7 + $0x8] sm:$0xff] }
 0x49b   :  { %v1191_v0 = vmax.f32 %v1183_v33, 0.0  ;;  %v1190_v48 = vmax.f32 %v1182_v29, 0.0  ;;  %v1192_v19 = vmax.f32 %v1184_v14, 0.0  ;;  %v1193_v32 = vmax.f32 %v1185_v31, 0.0 }
 0x49c   :  { %v2836_v5 = vmax.f32 %v1180_v58, 0.0  ;;  %v2838_v9 = vmax.f32 %v1179_v2, 0.0  ;;  %v1186_v11 = vmax.f32 %v1178_v61, 0.0  ;;  %v1189_v26 = vmax.f32 %v1181_v20, 0.0  ;;  %v1260_v2 = vld [vmem:[%s3177_s7 + $0x10] sm:$0xff] }
 0x49e   :  { %1234 = vrot.lane.b32.xlu1 %v2836_v5, %s2340_s4  ;;  %1230 = vrot.lane.b32.xlu0 %v2838_v9, %s2340_s4 }
 0x4a2   :  { %1232 = vrot.lane.b32.xlu1 %v1191_v0, %s2340_s4  ;;  %1226 = vrot.lane.b32.xlu0 %v1186_v11, %s2340_s4 }
 0x4a6   :  { %1198 = vrot.lane.b32.xlu1 %v2838_v9, %s2339_s23  ;;  %1238 = vrot.lane.b32.xlu0 %v1189_v26, %s2340_s4 }
 0x4aa   :  { %1228 = vrot.lane.b32.xlu1 %v1190_v48, %s2340_s4  ;;  %1236 = vrot.lane.b32.xlu0 %v1192_v19, %s2340_s4 }
 0x4ae   :  { %1240 = vrot.lane.b32.xlu1 %v1193_v32, %s2340_s4  ;;  %1194 = vrot.lane.b32.xlu0 %v1186_v11, %s2339_s23 }
 0x4b2   :  { %1196 = vrot.lane.b32.xlu1 %v1190_v48, %s2339_s23  ;;  %1200 = vrot.lane.b32.xlu0 %v1191_v0, %s2339_s23 }
 0x4b6   :  { %1208 = vrot.lane.b32.xlu1 %v1193_v32, %s2339_s23  ;;  %1206 = vrot.lane.b32.xlu0 %v1189_v26, %s2339_s23 }
 0x4ba   :  { %1204 = vrot.lane.b32.xlu1 %v1192_v19, %s2339_s23  ;;  %1202 = vrot.lane.b32.xlu0 %v2836_v5, %s2339_s23 }
 0x510   :  { %v1235_v62 = vpop.permute.xlu1 %1234  ;;  %v1231_v30 = vpop.permute.xlu0 %1230 }
 0x511   :  { %v1244_v42 = vsel %vm1061_vm5, %v1231_v30, %v1235_v62 }
 0x514   :  { %v1233_v35 = vpop.permute.xlu1 %1232  ;;  %v1227_v36 = vpop.permute.xlu0 %1226 }
 0x515   :  { %v1246_v43 = vsel %vm1061_vm5, %v1227_v36, %v1231_v30 }
 0x518   :  { %v1199_v37 = vpop.permute.xlu1 %1198  ;;  %v1239_v38 = vpop.permute.xlu0 %1238 }
 0x519   :  { %v1248_v21 = vsel %vm1061_vm5, %v1239_v38, %v1227_v36  ;;  %v1242_v22 = vsel %vm1061_vm5, %v1235_v62, %v1239_v38 }
 0x51c   :  { %v1229_v40 = vpop.permute.xlu1 %1228  ;;  %v1237_v34 = vpop.permute.xlu0 %1236 }
 0x51d   :  { %v1247_v41 = vsel %vm1061_vm5, %v1229_v40, %v1233_v35  ;;  %v1245_v8 = vsel %vm1061_vm5, %v1233_v35, %v1237_v34 }
 0x51e   :  { %2238 = vmatprep.subr.msk.mxu0 %vm2237_vm9, %v1245_v8 }
 0x51f   :  { %1296 = vmatpush1.msra.mxu0 %v1247_v41 }
 0x520   :  { %v1241_v44 = vpop.permute.xlu1 %1240  ;;  %2240 = vmatprep.subr.msk.mxu0 %vm2237_vm9, %v1244_v42  ;;  %v1195_v45 = vpop.permute.xlu0 %1194 }
 0x521   :  { %v1243_v46 = vsel %vm1061_vm5, %v1237_v34, %v1241_v44  ;;  %v1249_v18 = vsel %vm1061_vm5, %v1241_v44, %v1229_v40  ;;  %1298 = vmatpush1.msra.mxu0 %v1246_v43  ;;  %v1214_v56 = vsel %vm860_vm3, %v1195_v45, %v1199_v37 }
 0x522   :  { %1299 = vmatprep.subr.mxu0 %v1191_v0  ;;  %2250 = vmatprep.subr.msk.mxu1 %vm2249_vm10, %v1249_v18 }
 0x523   :  { %1300 = vmatpush1.msra.mxu0 %v1190_v48  ;;  %1385 = vmatpush1.msra.mxu1 %v1243_v46 }
 0x524   :  { %v1197_v50 = vpop.permute.xlu1 %1196  ;;  %1301 = vmatprep.subr.mxu0 %v2838_v9  ;;  %2252 = vmatprep.subr.msk.mxu1 %vm2249_vm10, %v1248_v21  ;;  %v1201_v7 = vpop.permute.xlu0 %1200 }
 0x525   :  { %1302 = vmatpush1.msra.mxu0 %v1186_v11  ;;  %1387 = vmatpush1.msra.mxu1 %v1242_v22  ;;  %v1215_v51 = vsel %vm860_vm3, %v1197_v50, %v1201_v7 }
 0x526   :  { %1303 = vmatprep.subr.mxu0 %v1215_v51  ;;  %1388 = vmatprep.subr.mxu1 %v1193_v32 }
 0x527   :  { %1389 = vmatpush1.msra.mxu1 %v1192_v19 }
 0x528   :  { %v1209_v53 = vpop.permute.xlu1 %1208  ;;  %1390 = vmatprep.subr.mxu1 %v1189_v26  ;;  %v1207_v54 = vpop.permute.xlu0 %1206 }
 0x529   :  { %v1217_v55 = vsel %vm860_vm3, %v1209_v53, %v1197_v50  ;;  %1391 = vmatpush1.msra.mxu1 %v2836_v5  ;;  %v1216_v59 = vsel %vm860_vm3, %v1207_v54, %v1195_v45 }
 0x52a   :  { %2242 = vmatpush1.msk.msra.mxu0 %vm2241_vm11, %v1217_v55 }
 0x52b   :  { %1305 = vmatprep.subr.mxu0 %v1214_v56 }
 0x52c   :  { %v1205_v60 = vpop.permute.xlu1 %1204  ;;  %2244 = vmatpush1.msk.msra.mxu0 %vm2241_vm11, %v1216_v59  ;;  %v1203_v15 = vpop.permute.xlu0 %1202 }
 0x52d   :  { %v1213_v16 = vsel %vm860_vm3, %v1201_v7, %v1205_v60  ;;  %2245 = vmatmul.mubr.msk.f32.vlgmr.msra.gmra.mxu0 %vm1262_vm12, %v1258_v57  ;;  %v1211_v23 = vsel %vm860_vm3, %v1205_v60, %v1209_v53  ;;  %v1210_v1 = vsel %vm860_vm3, %v1203_v15, %v1207_v54  ;;  %v1212_v58 = vsel %vm860_vm3, %v1199_v37, %v1203_v15 }
 0x52e   :  { %1392 = vmatprep.subr.mxu1 %v1211_v23  ;;  %1345 = vmatprep.mubr.f32.mxu0 %v2337_v3 }
 0x52f   :  { %2254 = vmatpush1.msk.msra.mxu1 %vm2253_vm13, %v1213_v16 }
 0x530   :  { %1394 = vmatprep.subr.mxu1 %v1210_v1 }
 0x531   :  { %2246 = vmatmul.mubr.msk.f32.gmra.mxu0 %vm1262_vm12, %v1259_v63  ;;  %2256 = vmatpush1.msk.msra.mxu1 %vm2253_vm13, %v1212_v58 }
 0x532   :  { %2257 = vmatmul.mubr.msk.f32.vlgmr.msra.gmra.mxu1 %vm1262_vm12, %v1258_v57  ;;  %1351 = vmatprep.mubr.f32.mxu0 %v2337_v3 }
 0x533   :  { %1434 = vmatprep.mubr.f32.mxu1 %v2337_v3 }
 0x535   :  { %2247 = vmatmul.mubr.msk.f32.gmra.mxu0 %vm1262_vm12, %v1260_v2 }
 0x536   :  { %2258 = vmatmul.mubr.msk.f32.gmra.mxu1 %vm1262_vm12, %v1259_v63  ;;  %1357 = vmatprep.mubr.f32.mxu0 %v2337_v3 }
 0x537   :  { %1440 = vmatprep.mubr.f32.mxu1 %v2337_v3 }
 0x539   :  { %2248 = vmatmul.mubr.msk.f32.gmra.mxu0 %vm1262_vm12, %v1261_v4 }
 0x53a   :  { %2259 = vmatmul.mubr.msk.f32.gmra.mxu1 %vm1262_vm12, %v1260_v2  ;;  %1723 = vmatprep.mubr.f32.mxu0 %v2337_v3 }
 0x53b   :  { %1446 = vmatprep.mubr.f32.mxu1 %v2337_v3 }
 0x53e   :  { %2260 = vmatmul.mubr.msk.f32.gmra.mxu1 %vm1262_vm12, %v1261_v4  ;;  %v1460_v4 = vld [vmem:[%s3179_s9 + $0x18] sm:$0xff] }
 0x53f   :  { %1794 = vmatprep.mubr.f32.mxu1 %v2337_v3 }
 0x5ed   :  { %v2942_v5 = vpop.f32.mrf.mxu0 }
 0x5ee   :  { %v1481_v48 = vmul.f32 %v2942_v5, %v2942_v5 }
 0x5ef   :  { %v2944_v9 = vpop.f32.mrf.mxu0 }
 0x5f0   :  { %v1461_v62 = vadd.f32 %v2944_v9, %v2942_v5  ;;  %v1482_v30 = vmul.f32 %v2944_v9, %v2944_v9 }
 0x5f1   :  { %v2946_v33 = vpop.f32.mrf.mxu0 }
 0x5f2   :  { %v2948_v61 = vpop.f32.mrf.mxu1  ;;  %v1485_v38 = vmul.f32 %v2946_v33, %v2946_v33  ;;  %v1497_v22 = vadd.f32 %v1482_v30, %v1481_v48 }
 0x5f3   :  { %v2950_v27 = vpop.f32.mrf.mxu0  ;;  %v1483_v50 = vmul.f32 %v2948_v61, %v2948_v61  ;;  %v1462_v53 = vadd.f32 %v1461_v62, %v2948_v61 }
 0x5f4   :  { %v1466_v49 = vadd.f32 %v2950_v27, %v2946_v33  ;;  %v2954_v17 = vpop.f32.mrf.mxu1  ;;  %v1486_v40 = vmul.f32 %v2950_v27, %v2950_v27 }
 0x5f5   :  { %v2956_v0 = vpop.f32.mrf.mxu0  ;;  %v1463_v60 = vadd.f32 %v1462_v53, %v2954_v17  ;;  %v1484_v15 = vmul.f32 %v2954_v17, %v2954_v17  ;;  %v1498_v1 = vadd.f32 %v1497_v22, %v1483_v50 }
 0x5f6   :  { %v1489_v11 = vmul.f32 %v2956_v0, %v2956_v0  ;;  %v2960_v20 = vpop.f32.mrf.mxu1  ;;  %v1502_v54 = vadd.f32 %v1486_v40, %v1485_v38 }
 0x5f7   :  { %v2962_v24 = vpop.f32.mrf.mxu0  ;;  %v1467_v12 = vadd.f32 %v1466_v49, %v2960_v20  ;;  %v1487_v7 = vmul.f32 %v2960_v20, %v2960_v20  ;;  %v1499_v2 = vadd.f32 %v1498_v1, %v1484_v15  ;;  %v1459_v49 = vld [vmem:[%s3179_s9 + $0x10] sm:$0xff]  ;;  %v1454_v1 = vld [vmem:[%s3178_s8 + $0x8] sm:$0xff] }
 0x5f8   :  { %v1471_v25 = vadd.f32 %v2962_v24, %v2956_v0  ;;  %v1490_v26 = vmul.f32 %v2962_v24, %v2962_v24  ;;  %v2969_v29 = vpop.f32.mrf.mxu1  ;;  %v1455_v15 = vld [vmem:[%s3178_s8 + $0x10] sm:$0xff] }
 0x5f9   :  { %v2971_v14 = vpop.f32.mrf.mxu0  ;;  %v1468_v39 = vadd.f32 %v1467_v12, %v2969_v29  ;;  %v1488_v23 = vmul.f32 %v2969_v29, %v2969_v29  ;;  %v1503_v63 = vadd.f32 %v1502_v54, %v1487_v7 }
 0x5fa   :  { %v1493_v19 = vmul.f32 %v2971_v14, %v2971_v14  ;;  %v2978_v31 = vpop.f32.mrf.mxu1  ;;  %v1507_v32 = vadd.f32 %v1490_v26, %v1489_v11 }
 0x5fb   :  { %v1491_v35 = vmul.f32 %v2978_v31, %v2978_v31  ;;  %1469 = vadd.xlane.f32.xlu1 %v1468_v39  ;;  %v2986_v36 = vpop.f32.mrf.mxu0  ;;  %v1472_v37 = vadd.f32 %v1471_v25, %v2978_v31  ;;  %v1504_v58 = vadd.f32 %v1503_v63, %v1488_v23  ;;  %v1458_v63 = vld [vmem:[%s3179_s9 + $0x8] sm:$0xff] }
 0x5fc   :  { %v1476_v34 = vadd.f32 %v2986_v36, %v2971_v14  ;;  %v1494_v41 = vmul.f32 %v2986_v36, %v2986_v36  ;;  %v2997_v8 = vpop.f32.mrf.mxu1 }
 0x5fd   :  { %v1473_v42 = vadd.f32 %v1472_v37, %v2997_v8  ;;  %v1492_v43 = vmul.f32 %v2997_v8, %v2997_v8  ;;  %v1508_v44 = vadd.f32 %v1507_v32, %v1491_v35 }
 0x5fe   :  { %v3002_v45 = vpop.f32.mrf.mxu1  ;;  %v1512_v46 = vadd.f32 %v1494_v41, %v1493_v19 }
 0x5ff   :  { %v1495_v18 = vmul.f32 %v3002_v45, %v3002_v45  ;;  %1474 = vadd.xlane.f32.xlu0 %v1473_v42  ;;  %v1477_v21 = vadd.f32 %v1476_v34, %v3002_v45  ;;  %v1509_v55 = vadd.f32 %v1508_v44, %v1492_v43 }
 0x600   :  { %v3011_v51 = vpop.f32.mrf.mxu1 }
 0x601   :  { %v1478_v56 = vadd.f32 %v1477_v21, %v3011_v51  ;;  %v1496_v57 = vmul.f32 %v3011_v51, %v3011_v51  ;;  %v1513_v59 = vadd.f32 %v1512_v46, %v1495_v18 }
 0x603   :  { %1510 = vadd.xlane.f32.xlu0 %v1509_v55  ;;  %1479 = vadd.xlane.f32.xlu1 %v1478_v56  ;;  %v1514_v16 = vadd.f32 %v1513_v59, %v1496_v57 }
 0x607   :  { %1515 = vadd.xlane.f32.xlu0 %v1514_v16  ;;  %1464 = vadd.xlane.f32.xlu1 %v1463_v60 }
 0x60b   :  { %1505 = vadd.xlane.f32.xlu0 %v1504_v58  ;;  %1500 = vadd.xlane.f32.xlu1 %v1499_v2  ;;  %v2127_v2 = vld [vmem:[#allocation2] sm:$0x1] }
 0x61c   :  { %1618 = vperm.xlu1 %2278, %v1460_v4  }
 0x620   :  { %1613 = vperm.xlu1 %2278, %v1459_v49  }
 0x684   :  { %v1470_v11 = vpop.xlane.xlu1 %1469 }
 0x685   :  { %v3034_v30 = vmul.f32 0.001953125, %v1470_v11  ;;  %v1456_v11 = vld [vmem:[%s3178_s8 + $0x18] sm:$0xff] }
 0x687   :  { %v1526_v44 = vmul.f32 %v3034_v30, %v3034_v30 }
 0x688   :  { %v1475_v12 = vpop.xlane.xlu0 %1474 }
 0x689   :  { %v3028_v25 = vmul.f32 0.001953125, %v1475_v12 }
 0x68b   :  { %v1527_v48 = vmul.f32 %v3028_v25, %v3028_v25 }
 0x68c   :  { %v1511_v26 = vpop.xlane.xlu0 %1510  ;;  %v1480_v39 = vpop.xlane.xlu1 %1479 }
 0x68d   :  { %v1523_v19 = vmul.f32 0.001953125, %v1511_v26  ;;  %v3032_v32 = vmul.f32 0.001953125, %v1480_v39  ;;  %v1453_v39 = vld [vmem:[%s3178_s8] sm:$0xff] }
 0x68f   :  { %v1531_v62 = vsub.f32 %v1523_v19, %v1527_v48  ;;  %v1528_v34 = vmul.f32 %v3032_v32, %v3032_v32  ;;  %v1457_v19 = vld [vmem:[%s3179_s9] sm:$0xff] }
 0x690   :  { %v1516_v35 = vpop.xlane.xlu0 %1515  ;;  %v1465_v37 = vpop.xlane.xlu1 %1464 }
 0x691   :  { %v1535_v38 = vmax.f32 %v1531_v62, 0.0  ;;  %v1524_v40 = vmul.f32 0.001953125, %v1516_v35  ;;  %v3038_v41 = vmul.f32 0.001953125, %v1465_v37 }
 0x693   :  { %v1539_v42 = vadd.f32 1e-05, %v1535_v38  ;;  %v1532_v43 = vsub.f32 %v1524_v40, %v1528_v34  ;;  %v1525_v22 = vmul.f32 %v3038_v41, %v3038_v41  ;;  %v1553_v38 = vsub.f32 %v2946_v33, %v3034_v30 }
 0x694   :  { %v1506_v46 = vpop.xlane.xlu0 %1505  ;;  %v1501_v18 = vpop.xlane.xlu1 %1500  ;;  %v1554_v40 = vsub.f32 %v2950_v27, %v3034_v30  ;;  %v1555_v34 = vsub.f32 %v2960_v20, %v3034_v30  ;;  %v1560_v33 = vsub.f32 %v2997_v8, %v3028_v25  ;;  %v1561_v27 = vsub.f32 %v2971_v14, %v3032_v32 }
 0x695   :  { %2291 = vrsqrt.f32 %v1539_v42  ;;  %v1522_v21 = vmul.f32 0.001953125, %v1506_v46  ;;  %v1521_v50 = vmul.f32 0.001953125, %v1501_v18  ;;  %v1536_v7 = vmax.f32 %v1532_v43, 0.0 }
 0x696   :  { %v1557_v43 = vsub.f32 %v2956_v0, %v3028_v25  ;;  %v1559_v46 = vsub.f32 %v2978_v31, %v3028_v25  ;;  %v1556_v18 = vsub.f32 %v2969_v29, %v3034_v30  ;;  %v1562_v20 = vsub.f32 %v2986_v36, %v3032_v32 }
 0x697   :  { %v1530_v53 = vsub.f32 %v1522_v21, %v1526_v44  ;;  %v1529_v54 = vsub.f32 %v1521_v50, %v1525_v22  ;;  %v1540_v56 = vadd.f32 1e-05, %v1536_v7  ;;  %v1558_v44 = vsub.f32 %v2962_v24, %v3028_v25 }
 0x698   :  { %v1619_v62 = vpop.permute.xlu1 %1618  ;;  %v1563_v0 = vsub.f32 %v3002_v45, %v3032_v32  ;;  %v1564_v31 = vsub.f32 %v3011_v51, %v3032_v32  ;;  %v1549_v36 = vsub.f32 %v2942_v5, %v3038_v41  ;;  %v1550_v45 = vsub.f32 %v2944_v9, %v3038_v41 }
 0x699   :  { %v1534_v55 = vmax.f32 %v1530_v53, 0.0  ;;  %v1533_v59 = vmax.f32 %v1529_v54, 0.0 }
 0x69b   :  { %v1538_v57 = vadd.f32 1e-05, %v1534_v55  ;;  %v1537_v60 = vadd.f32 1e-05, %v1533_v59 }
 0x69c   :  { %v1614_v35 = vpop.permute.xlu1 %1613 }
 0x69d   :  { %2293 = vrsqrt.f32 %v1538_v57 }
 0x69e   :  { %2295 = vrsqrt.f32 %v1540_v56  ;;  %v1551_v56 = vsub.f32 %v2948_v61, %v3038_v41 }
 0x69f   :  { %2297 = vrsqrt.f32 %v1537_v60 }
 0x6a2   :  { %v2292_v16 = vpop.eup %2291 }
 0x6a3   :  { %v1547_v23 = vmul.f32 %v2292_v16, %v1455_v15  ;;  %v1552_v16 = vsub.f32 %v2954_v17, %v3038_v41 }
 0x6a5   :  { %1577 = vperm.xlu1 %2278, %v1547_v23  }
 0x6a9   :  { %1608 = vperm.xlu1 %2278, %v1458_v63  }
 0x6aa   :  { %v2294_v58 = vpop.eup %2293 }
 0x6ab   :  { %v1546_v4 = vmul.f32 %v2294_v58, %v1454_v1  ;;  %v2296_v49 = vpop.eup %2295 }
 0x6ac   :  { %v1548_v12 = vmul.f32 %v2296_v49, %v1456_v11  ;;  %v2298_v26 = vpop.eup %2297 }
 0x6ad   :  { %1572 = vperm.xlu0 %2277, %v1546_v4   ;;  %2130 = vperm.xlu1 %2278, %v2127_v2   ;;  %v1545_v48 = vmul.f32 %v2298_v26, %v1453_v39 }
 0x6b1   :  { %1582 = vperm.xlu0 %2277, %v1548_v12  }
 0x6b5   :  { %1567 = vperm.xlu0 %2277, %v1545_v48  }
 0x6b9   :  { %1603 = vperm.xlu0 %2277, %v1457_v19  }
 0x720   :  { %v1578_v37 = vpop.permute.xlu1 %1577 }
 0x721   :  { %v1593_v21 = vmul.f32 %v1578_v37, %v1557_v43  ;;  %v1594_v24 = vmul.f32 %v1578_v37, %v1558_v44  ;;  %v1595_v22 = vmul.f32 %v1578_v37, %v1559_v46  ;;  %v1596_v50 = vmul.f32 %v1578_v37, %v1560_v33 }
 0x723   :  { %v1629_v60 = vadd.f32 %v1614_v35, %v1593_v21  ;;  %v1630_v63 = vadd.f32 %v1614_v35, %v1594_v24  ;;  %v1632_v1 = vadd.f32 %v1614_v35, %v1596_v50  ;;  %v1631_v58 = vadd.f32 %v1614_v35, %v1595_v22  ;;  %v1653_v21 = vld [vmem:[%s3180_s10] sm:$0x1]  ;;  %v1655_v24 = vld [vmem:[%s3180_s10 + $0x2] sm:$0x1]  ;;  %v1654_v22 = vld [vmem:[%s3180_s10 + $0x1] sm:$0x1] }
 0x724   :  { %v1609_v15 = vpop.permute.xlu1 %1608  ;;  %s2342_s10 = smov [#allocation3]  }
 0x725   :  { %v1646_v19 = vmax.f32 %v1630_v63, 0.0  ;;  %v1645_v35 = vmax.f32 %v1629_v60, 0.0 }
 0x728   :  { %v1573_v42 = vpop.permute.xlu0 %1572 }
 0x729   :  { %v1589_v29 = vmul.f32 %v1573_v42, %v1553_v38  ;;  %v1590_v30 = vmul.f32 %v1573_v42, %v1554_v40  ;;  %v1592_v7 = vmul.f32 %v1573_v42, %v1556_v18  ;;  %v1591_v55 = vmul.f32 %v1573_v42, %v1555_v34 }
 0x72a   :  { %v1647_v40 = vmax.f32 %v1631_v58, 0.0 }
 0x72b   :  { %v1625_v5 = vadd.f32 %v1609_v15, %v1589_v29  ;;  %v1626_v2 = vadd.f32 %v1609_v15, %v1590_v30  ;;  %v1628_v4 = vadd.f32 %v1609_v15, %v1592_v7  ;;  %v1627_v12 = vadd.f32 %v1609_v15, %v1591_v55 }
 0x72c   :  { %v1583_v8 = vpop.permute.xlu0 %1582 }
 0x72d   :  { %v1597_v25 = vmul.f32 %v1583_v8, %v1561_v27  ;;  %v1598_v53 = vmul.f32 %v1583_v8, %v1562_v20  ;;  %v1599_v14 = vmul.f32 %v1583_v8, %v1563_v0  ;;  %v1600_v54 = vmul.f32 %v1583_v8, %v1564_v31 }
 0x72e   :  { %v1642_v42 = vmax.f32 %v1626_v2, 0.0  ;;  %v1644_v43 = vmax.f32 %v1628_v4, 0.0  ;;  %v1641_v44 = vmax.f32 %v1625_v5, 0.0  ;;  %v1643_v27 = vmax.f32 %v1627_v12, 0.0 }
 0x72f   :  { %v1633_v51 = vadd.f32 %v1619_v62, %v1597_v25  ;;  %v1635_v32 = vadd.f32 %v1619_v62, %v1599_v14  ;;  %v1634_v57 = vadd.f32 %v1619_v62, %v1598_v53  ;;  %v1636_v59 = vadd.f32 %v1619_v62, %v1600_v54  ;;  %v2131_v53 = vpop.permute.xlu1 %2130 }
 0x730   :  { %v1568_v23 = vpop.permute.xlu0 %1567  ;;  %v1648_v62 = vmax.f32 %v1632_v1, 0.0 }
 0x731   :  { %v3094_v9 = vmax.f32 %v1634_v57, 0.0  ;;  %v3096_v49 = vmax.f32 %v1636_v59, 0.0  ;;  %v3098_v61 = vmax.f32 %v1633_v51, 0.0  ;;  %v3100_v11 = vmax.f32 %v1635_v32, 0.0 }
 0x732   :  { %v1585_v26 = vmul.f32 %v1568_v23, %v1549_v36  ;;  %v1586_v39 = vmul.f32 %v1568_v23, %v1550_v45  ;;  %v1587_v48 = vmul.f32 %v1568_v23, %v1551_v56  ;;  %v1588_v17 = vmul.f32 %v1568_v23, %v1552_v16 }
 0x733   :  { %1683 = vmatprep.subr.mxu0 %v3094_v9  ;;  %1754 = vmatprep.subr.mxu1 %v3096_v49  ;;  %v2134_v36 = vshrl.u32 %v44_v28, 7 }
 0x734   :  { %v1604_v41 = vpop.permute.xlu0 %1603  ;;  %1684 = vmatpush1.msra.mxu0 %v3098_v61  ;;  %1755 = vmatpush1.msra.mxu1 %v3100_v11 }
 0x735   :  { %v1621_v37 = vadd.f32 %v1604_v41, %v1585_v26  ;;  %v1623_v38 = vadd.f32 %v1604_v41, %v1587_v48  ;;  %v1622_v34 = vadd.f32 %v1604_v41, %v1586_v39  ;;  %1685 = vmatprep.subr.mxu0 %v1646_v19  ;;  %1756 = vmatprep.subr.mxu1 %v1648_v62  ;;  %v2135_v57 = vsub.s32 0, %v2134_v36 }
 0x736   :  { %v1624_v46 = vadd.f32 %v1604_v41, %v1588_v17  ;;  %1686 = vmatpush1.msra.mxu0 %v1645_v35  ;;  %1757 = vmatpush1.msra.mxu1 %v1647_v40 }
 0x737   :  { %v1637_v18 = vmax.f32 %v1621_v37, 0.0  ;;  %v1639_v33 = vmax.f32 %v1623_v38, 0.0  ;;  %v1638_v20 = vmax.f32 %v1622_v34, 0.0  ;;  %1687 = vmatprep.subr.mxu0 %v1642_v42  ;;  %1758 = vmatprep.subr.mxu1 %v1644_v43  ;;  %v2136_v13 = vrot.slane %v2131_v53, %v2135_v57 }
 0x738   :  { %v1640_v0 = vmax.f32 %v1624_v46, 0.0  ;;  %1688 = vmatpush1.msra.mxu0 %v1641_v44  ;;  %1759 = vmatpush1.msra.mxu1 %v1643_v27 }
 0x739   :  { %1689 = vmatprep.subr.mxu0 %v1638_v20 }
 0x73a   :  { %1760 = vmatprep.subr.mxu1 %v1640_v0  ;;  %1690 = vmatpush1.msra.mxu0 %v1637_v18 }
 0x73b   :  { %1761 = vmatpush1.msra.mxu1 %v1639_v33  ;;  %2261 = vmatmul.mubr.msk.f32.vlgmr.msra.gmra.mxu0 %vm523_vm2, %v1653_v21 }
 0x73c   :  { %1828 = vmatprep.subr.mxu0 %v3094_v9  ;;  %1899 = vmatprep.subr.mxu1 %v3096_v49 }
 0x73d   :  { %2262 = vmatmul.mubr.msk.f32.vlgmr.msra.gmra.mxu1 %vm523_vm2, %v1653_v21  ;;  %1829 = vmatpush1.msra.mxu0 %v3098_v61  ;;  %v2341_v21 = vmov 1966171168  }
 0x73e   :  { %1900 = vmatpush1.msra.mxu1 %v3100_v11  ;;  %1830 = vmatprep.subr.mxu0 %v1646_v19 }
 0x73f   :  { %1901 = vmatprep.subr.mxu1 %v1648_v62  ;;  %1831 = vmatpush1.msra.mxu0 %v1645_v35 }
 0x740   :  { %1902 = vmatpush1.msra.mxu1 %v1647_v40  ;;  %1832 = vmatprep.subr.mxu0 %v1642_v42 }
 0x741   :  { %1903 = vmatprep.subr.mxu1 %v1644_v43  ;;  %1833 = vmatpush1.msra.mxu0 %v1641_v44 }
 0x742   :  { %1904 = vmatpush1.msra.mxu1 %v1643_v27  ;;  %1834 = vmatprep.subr.mxu0 %v1638_v20 }
 0x743   :  { %1905 = vmatprep.subr.mxu1 %v1640_v0  ;;  %1835 = vmatpush1.msra.mxu0 %v1637_v18 }
 0x744   :  { %1868 = vmatprep.mubr.f32.mxu0 %v2337_v3  ;;  %1906 = vmatpush1.msra.mxu1 %v1639_v33 }
 0x745   :  { %2263 = vmatmul.mubr.msk.f32.vlgmr.msra.gmra.mxu0 %vm523_vm2, %v1655_v24  ;;  %1939 = vmatprep.mubr.f32.mxu1 %v2337_v3 }
 0x746   :  { %1989 = vmatprep.subr.mxu0 %v3094_v9  ;;  %2060 = vmatprep.subr.mxu1 %v3096_v49 }
 0x747   :  { %2264 = vmatmul.mubr.msk.f32.vlgmr.msra.gmra.mxu1 %vm523_vm2, %v1655_v24  ;;  %1990 = vmatpush1.msra.mxu0 %v3098_v61  ;;  %v2172_v24 = vunpack.c.l.s4 %v2341_v21 }
 0x748   :  { %2061 = vmatpush1.msra.mxu1 %v3100_v11  ;;  %1991 = vmatprep.subr.mxu0 %v1646_v19 }
 0x749   :  { %2062 = vmatprep.subr.mxu1 %v1648_v62  ;;  %1992 = vmatpush1.msra.mxu0 %v1645_v35 }
 0x74a   :  { %2063 = vmatpush1.msra.mxu1 %v1647_v40  ;;  %1993 = vmatprep.subr.mxu0 %v1642_v42 }
 0x74b   :  { %2064 = vmatprep.subr.mxu1 %v1644_v43  ;;  %1994 = vmatpush1.msra.mxu0 %v1641_v44 }
 0x74c   :  { %2065 = vmatpush1.msra.mxu1 %v1643_v27  ;;  %1995 = vmatprep.subr.mxu0 %v1638_v20 }
 0x74d   :  { %2066 = vmatprep.subr.mxu1 %v1640_v0  ;;  %1996 = vmatpush1.msra.mxu0 %v1637_v18 }
 0x74e   :  { %2067 = vmatpush1.msra.mxu1 %v1639_v33  ;;  %2029 = vmatprep.mubr.f32.mxu0 %v2337_v3 }
 0x74f   :  { %2100 = vmatprep.mubr.f32.mxu1 %v2337_v3  ;;  %2265 = vmatmul.mubr.msk.f32.vlgmr.msra.gmra.mxu0 %vm523_vm2, %v1654_v22 }
 0x750   :  { %2266 = vmatmul.mubr.msk.f32.vlgmr.msra.gmra.mxu1 %vm523_vm2, %v1654_v22  ;;  %v2173_v22 = vunpack.c.0.s8 %v2172_v24 }
 0x7fb   :  { %v1725_v31 = vpop.f32.mrf.mxu0 }
 0x7fc   :  { %1946 = vrot.lane.b32.xlu0 %v1725_v31, %s2339_s23 }
 0x7fd   :  { %v1727_v50 = vpop.f32.mrf.mxu0  ;;  %v1796_v29 = vpop.f32.mrf.mxu1 }
 0x7fe   :  { %1948 = vrot.lane.b32.xlu1 %v1727_v50, %s2339_s23 }
 0x7ff   :  { %v1798_v30 = vpop.f32.mrf.mxu1 }
 0x800   :  { %1950 = vrot.lane.b32.xlu0 %v1796_v29, %s2339_s23 }
 0x802   :  { %1952 = vrot.lane.b32.xlu1 %v1798_v30, %s2339_s23  ;;  %v2176_v30 = vsub.s32 %v2173_v22, %v2134_v36  ;;  %s2205_s23 = sshll.u32 %s2342_s10, 4  ;;  %s2206_s23 = int_to_ptr.vmem [resolvable:$true] %s2205_s23 }
 0x803   :  { %p2320_p1 = scmp.lt.s32.totalorder %s2206_s23, %s2206_s23 }
 0x805   :  { %v1870_v7 = vpop.f32.mrf.mxu0 }
 0x806   :  { %2107 = vrot.lane.b32.xlu0 %v1870_v7, %s2340_s4 }
 0x807   :  { %v1872_v3 = vpop.f32.mrf.mxu0  ;;  %v1941_v8 = vpop.f32.mrf.mxu1 }
 0x808   :  { %2109 = vrot.lane.b32.xlu1 %v1872_v3, %s2340_s4 }
 0x809   :  { %v1943_v25 = vpop.f32.mrf.mxu1 }
 0x80a   :  { %2111 = vrot.lane.b32.xlu0 %v1941_v8, %s2340_s4 }
 0x80c   :  { %2113 = vrot.lane.b32.xlu1 %v1943_v25, %s2340_s4  ;;  %s2315_s4 = scalar_lea.vmem %s2206_s23, 64 }
 0x80d   :  { %p2316_p0 = scmp.ne.s32.totalorder %s2206_s23, %s2315_s4  ;;  %p2321_p2 = scmp.lt.s32.totalorder %s2315_s4, %s2315_s4 }
 0x80f   :  { %v2031_v51 = vpop.f32.mrf.mxu0  ;;  %p2322_p3 = por %p2321_p2, %p2320_p1 }
 0x810   :  { %v2102_v16 = vpop.f32.mrf.mxu1 }
 0x811   :  { %v2033_v63 = vpop.f32.mrf.mxu0  ;;  %p2323_p4 = pnand %p2322_p3, %p2316_p0 }
 0x812   :  { %v2104_v49 = vpop.f32.mrf.mxu1 }
 0x86e   :  { %v1947_v14 = vpop.permute.xlu0 %1946 }
 0x870   :  { %v1949_v54 = vpop.permute.xlu1 %1948 }
 0x871   :  { %v1956_v23 = vsel %vm860_vm3, %v1947_v14, %v1949_v54 }
 0x872   :  { %v1951_v55 = vpop.permute.xlu0 %1950  ;;  %v2034_v61 = vadd.f32 %v2033_v63, %v1956_v23 }
 0x873   :  { %v1955_v59 = vsel %vm860_vm3, %v1949_v54, %v1951_v55 }
 0x874   :  { %v1953_v45 = vpop.permute.xlu1 %1952  ;;  %v1960_v5 = vsel %vm2730_vm7, 0.0, %v1955_v59 }
 0x875   :  { %v1957_v56 = vsel %vm860_vm3, %v1953_v45, %v1947_v14  ;;  %v1954_v9 = vsel %vm860_vm3, %v1951_v55, %v1953_v45  ;;  %v2103_v26 = vadd.f32 %v2102_v16, %v1960_v5 }
 0x876   :  { %v1958_v32 = vsel %vm2712_vm4, 0.0, %v1957_v56  ;;  %v2105_v10 = vadd.f32 %v2104_v49, %v1954_v9 }
 0x877   :  { %v2032_v15 = vadd.f32 %v2031_v51, %v1958_v32 }
 0x878   :  { %v2108_v60 = vpop.permute.xlu0 %2107 }
 0x87a   :  { %v2110_v1 = vpop.permute.xlu1 %2109 }
 0x87b   :  { %v2117_v58 = vsel %vm1061_vm5, %v2108_v60, %v2110_v1 }
 0x87c   :  { %v2123_v2 = vadd.f32 %v2117_v58, %v2032_v15  ;;  %v2112_v4 = vpop.permute.xlu0 %2111 }
 0x87d   :  { %v2116_v11 = vsel %vm1061_vm5, %v2110_v1, %v2112_v4 }
 0x87e   :  { %v2137_v12 = vadd.f32 %v2136_v13, %v2123_v2  ;;  %v2120_v39 = vsel %vm2726_vm6, 0.0, %v2116_v11  ;;  %v2114_v48 = vpop.permute.xlu1 %2113 }
 0x87f   :  { %v2124_v17 = vadd.f32 %v2120_v39, %v2034_v61  ;;  %v2115_v41 = vsel %vm1061_vm5, %v2112_v4, %v2114_v48  ;;  %v2118_v19 = vsel %vm1061_vm5, %v2114_v48, %v2108_v60 }
 0x880   :  { %v2267_v62 = vmul.f32 -1.442695, %v2137_v12  ;;  %v2122_v35 = vsel %vm2767_vm8, 0.0, %v2118_v19  ;;  %v2125_v37 = vadd.f32 %v2115_v41, %v2103_v26 }
 0x881   :  { %v2138_v38 = vadd.f32 %v2136_v13, %v2124_v17  ;;  %v2126_v40 = vadd.f32 %v2122_v35, %v2105_v10 }
 0x882   :  { %2299 = vpow2.f32 %v2267_v62  ;;  %v2139_v34 = vadd.f32 %v2136_v13, %v2125_v37 }
 0x883   :  { %v2268_v6 = vmul.f32 -1.442695, %v2138_v38  ;;  %v2140_v42 = vadd.f32 %v2136_v13, %v2126_v40 }
 0x884   :  { %v2269_v43 = vmul.f32 -1.442695, %v2139_v34 }
 0x885   :  { %2301 = vpow2.f32 %v2268_v6  ;;  %v2270_v44 = vmul.f32 -1.442695, %v2140_v42 }
 0x886   :  { %2303 = vpow2.f32 %v2269_v43 }
 0x887   :  { %2305 = vpow2.f32 %v2270_v44 }
 0x88f   :  { %v2300_v46 = vpop.eup %2299 }
 0x890   :  { %v2153_v18 = vadd.f32 1.0, %v2300_v46 }
 0x892   :  { %v2302_v52 = vpop.eup %2301  ;;  %2307 = vrcp.f32 %v2153_v18 }
 0x893   :  { %v2304_v33 = vpop.eup %2303  ;;  %v2154_v27 = vadd.f32 1.0, %v2302_v52 }
 0x894   :  { %v2306_v20 = vpop.eup %2305  ;;  %v2155_v47 = vadd.f32 1.0, %v2304_v33 }
 0x895   :  { %2309 = vrcp.f32 %v2154_v27  ;;  %v2156_v0 = vadd.f32 1.0, %v2306_v20 }
 0x896   :  { %2311 = vrcp.f32 %v2155_v47 }
 0x897   :  { %2313 = vrcp.f32 %v2156_v0 }
 0x89f   :  { %v2308_v31 = vpop.eup %2307 }
 0x8a2   :  { %v2310_v50 = vpop.eup %2309 }
 0x8a3   :  { %v2312_v29 = vpop.eup %2311  ;;  %v2169_v7 = vcombine.low %v2308_v31, %v2310_v50 }
 0x8a4   :  { %v2314_v3 = vpop.eup %2313 }
 0x8a5   :  { %v2170_v8 = vcombine.low %v2312_v29, %v2314_v3  ;;  %v2177_v25 = vrot.slane %v2169_v7, %v2176_v30 }
 0x8a7   :  { %v2184_v53 = vrot.slane %v2170_v8, %v2176_v30 }
 0x8a9   :  { %v2185_v14 = vcombine.low %v2177_v25, %v2184_v53 }
 0x8ab   :  { %v2192_v54 = vrot.slane %v2185_v14, %v2176_v30 }
 0x8ad   :  { %2198 = vst.msk [vmem:[#allocation3] sm:$0xf] %vm2196_vm14, %v2192_v54 }
 0x8ae   :  { %2326 = shalt.err (!%p2323_p4)
}
 0x8af   :  { %2208 = dma.vmem_to_hbm [thread:$0]  %s2206_s23, 64, %s3182_s12, [#allocation4]  }
 0x8b0   :  { %2335 = dma.done.wait [#allocation4], 64  }
 0x8b1   :  { %2336 = vsyncadd [#allocation4], 4294967232 }
 0x8b2   :  { %2212 = vsyncpa [#allocation4], 1 }

</bundles_post_ra>
